<compile_context>
chip_gen: v5e
topology: v5e:2x2
jax: 0.10.0
libtpu: 0.0.40
codegen_flags: <defaults>
</compile_context>

<pallas_src>
import functools

import jax
import jax.numpy as jnp
from jax.experimental import pallas as pl
from jax.experimental.pallas import tpu as pltpu


def _cdiv(a, b):
    return -(-a // b)


def _round_up(x, m):
    return ((x + m - 1) // m) * m


def _choose_spatial_tile(n, s, c, itemsize):
    """Lane-dense spatial tile: multiple of 128 (or == S), ~3 MiB per block."""
    # Real VMEM footprint of a (1, C, TS) block pads C up to a full sublane
    # group; 8 rows is a safe upper bound across dtypes.
    c_pad = max(8, _round_up(c, 8))
    per_lane_bytes = c_pad * itemsize

    # ~3 MiB padded bytes per block -> {2x in, 2x out} double buffers ~12 MiB.
    target_block_bytes = 3 * 1024 * 1024
    ts = max(128, (target_block_bytes // per_lane_bytes) // 128 * 128)

    if ts >= s:
        if s <= 128 or s % 128 == 0:
            ts = s                      # block == full spatial dim (legal)
        else:
            ts = (s // 128) * 128       # one full + one masked trailing block

    # Keep both v7x TensorCores busy and >=2 pipeline steps per core on small
    # tensors, but never shrink a block below ~1 MiB (HBM-roofline floor).
    while (n * _cdiv(s, ts) < 8
           and (ts // 2 // 128) * 128 * per_lane_bytes >= (1 << 20)):
        ts = (ts // 2 // 128) * 128

    return ts


# ----------------------------- Pallas kernel -------------------------------
def _sse3d_kernel(w_ref, b_ref, x_ref, o_ref):
    """Spatial squeeze-and-excite on one (1, C, TS) tile.

    w_ref: (1, C, 1)  conv weight, f32 (grid-invariant VMEM block)
    b_ref: (1,)       conv bias,   f32 (SMEM scalar)
    x_ref: (1, C, TS) input tile   (VMEM, native dtype)
    o_ref: (1, C, TS) output tile  (VMEM, native dtype)
    """
    x = x_ref[...]                                  # native dtype (no f32 copy of x)
    w = w_ref[...]                                  # (1, C, 1) f32

    # 1x1x1 conv over channels == per-voxel dot product: cross-sublane reduce
    # in f32 for fidelity with the PyTorch module.
    logit = jnp.sum(x.astype(jnp.float32) * w, axis=1, keepdims=True) + b_ref[0]
    gate = jax.nn.sigmoid(logit)                    # (1, 1, TS), EUP

    # Gating multiply + store in the input dtype (bf16 VALU on v6e/v7x).
    o_ref[...] = (x * gate.astype(x.dtype)).astype(o_ref.dtype)


# ------------------------------- wrapper ------------------------------------
@functools.partial(jax.jit, static_argnames=("donate_x",))
def spatial_se_layer_3d(x_ncdhw, conv_w, conv_b, *, donate_x=False):
    """x: (N, C, D, H, W); conv_w: (1, C, 1, 1, 1); conv_b: (1,)."""
    n, c, d, h, w = x_ncdhw.shape
    s = d * h * w
    in_dtype = x_ncdhw.dtype
    itemsize = jnp.dtype(in_dtype).itemsize

    x = x_ncdhw.reshape(n, c, s)                    # free reshape (NCDHW-major)
    ts = _choose_spatial_tile(n, s, c, itemsize)
    grid = (n, _cdiv(s, ts))                        # trailing partial block masked

    w_vmem = conv_w.reshape(1, c, 1).astype(jnp.float32)
    b_smem = conv_b.reshape(1).astype(jnp.float32)

    out = pl.pallas_call(
        _sse3d_kernel,
        out_shape=jax.ShapeDtypeStruct((n, c, s), in_dtype),
        grid=grid,
        in_specs=[
            pl.BlockSpec((1, c, 1), lambda i, j: (0, 0, 0)),     # weight (invariant)
            pl.BlockSpec(memory_space=pltpu.MemorySpace.SMEM),   # bias scalar
            pl.BlockSpec((1, c, ts), lambda i, j: (i, 0, j)),    # x tile
        ],
        out_specs=pl.BlockSpec((1, c, ts), lambda i, j: (i, 0, j)),
        input_output_aliases={2: 0} if donate_x else {},
        compiler_params=pltpu.CompilerParams(
            dimension_semantics=("parallel", "parallel"),
            vmem_limit_bytes=32 * 1024 * 1024,
        ),
        cost_estimate=pl.CostEstimate(
            flops=int(3 * n * c * s),               # channel dot + gating multiply
            transcendentals=int(n * s),             # sigmoid
            bytes_accessed=int(2 * n * c * s * itemsize + c * 4 + 4),
        ),
    )(w_vmem, b_smem, x)

    return out.reshape(n, c, d, h, w)


# ------------------------------- example -----------------------------------
if __name__ == "__main__":
    key = jax.random.PRNGKey(0)
    k_x, k_w, k_b = jax.random.split(key, 3)

    N, C, D, H, W = 2, 4, 16, 16, 16

    x = jax.random.normal(k_x, (N, C, D, H, W), dtype=jnp.float32)

    # Conv3d(C, 1, kernel_size=1): weight (1, C, 1, 1, 1), bias (1,)
    # kaiming_normal_(mode='fan_out', nonlinearity='relu') -> std = sqrt(2/1)
    conv_w = jax.random.normal(k_w, (1, C, 1, 1, 1), jnp.float32) * jnp.sqrt(2.0)
    # PyTorch default bias init: U(-1/sqrt(fan_in), 1/sqrt(fan_in)), fan_in = C
    bound = 1.0 / jnp.sqrt(float(C))
    conv_b = jax.random.uniform(k_b, (1,), jnp.float32, -bound, bound)

    out = spatial_se_layer_3d(x, conv_w, conv_b)
    out = jax.block_until_ready(out)

    # Pure-JAX reference for correctness.
    logits = jnp.einsum("ncdhw,c->ndhw", x, conv_w.reshape(C)) + conv_b[0]
    ref = x * jax.nn.sigmoid(logits)[:, None, :, :, :]

    assert out.shape == (N, C, D, H, W), out.shape
    assert bool(jnp.all(jnp.isfinite(out))), "non-finite output"
    assert bool(jnp.allclose(out, ref, atol=1e-5, rtol=1e-5)), "mismatch vs reference"

    print("KERNEL_OK")
</pallas_src>

<mosaic_0001>
module attributes {stable_mosaic.version = 11 : i64} {
  func.func @_sse3d_kernel(%arg0: i32, %arg1: i32, %arg2: memref<1x4x1xf32, #tpu.memory_space<vmem>>, %arg3: memref<1xf32, #tpu.memory_space<smem>>, %arg4: memref<1x4x4096xf32, #tpu.memory_space<vmem>>, %arg5: memref<1x4x4096xf32, #tpu.memory_space<vmem>>) attributes {dimension_semantics = [#tpu.dimension_semantics<parallel>, #tpu.dimension_semantics<parallel>], iteration_bounds = array<i64: 2, 1>, scalar_prefetch = 0 : i64, scratch_operands = 0 : i64, tpu.core_type = #tpu.core_type<tc>, window_params = [{pipeline_mode = #tpu.pipeline_mode<synchronous>, transform_indices = @transform_0, window_bounds = array<i64: 1, 4, 1>}, {transform_indices = @transform_1, window_bounds = array<i64: 1>}, {transform_indices = @transform_2, window_bounds = array<i64: 1, 4, 4096>}, {transform_indices = @transform_3, window_bounds = array<i64: 1, 4, 4096>}]} {
    %c0 = arith.constant 0 : index
    %c0_0 = arith.constant 0 : index
    %c0_1 = arith.constant 0 : index
    %0 = vector.load %arg4[%c0, %c0_0, %c0_1] : memref<1x4x4096xf32, #tpu.memory_space<vmem>>, vector<1x4x4096xf32>
    %c0_2 = arith.constant 0 : index
    %c0_3 = arith.constant 0 : index
    %c0_4 = arith.constant 0 : index
    %1 = vector.load %arg2[%c0_2, %c0_3, %c0_4] : memref<1x4x1xf32, #tpu.memory_space<vmem>>, vector<1x4x1xf32>
    %2 = vector.broadcast %1 : vector<1x4x1xf32> to vector<1x4x4096xf32>
    %3 = arith.mulf %0, %2 : vector<1x4x4096xf32>
    %cst = arith.constant dense<0.000000e+00> : vector<1x4096xf32>
    %4 = vector.multi_reduction <add>, %3, %cst [1] : vector<1x4x4096xf32> to vector<1x4096xf32>
    %5 = vector.shape_cast %4 : vector<1x4096xf32> to vector<1x1x4096xf32>
    %c0_5 = arith.constant 0 : index
    %6 = memref.load %arg3[%c0_5] : memref<1xf32, #tpu.memory_space<smem>>
    %7 = vector.broadcast %6 : f32 to vector<1x1x4096xf32>
    %8 = arith.addf %5, %7 : vector<1x1x4096xf32>
    %9 = arith.negf %8 : vector<1x1x4096xf32>
    %10 = math.exp %9 : vector<1x1x4096xf32>
    %cst_6 = arith.constant 1.000000e+00 : f32
    %11 = vector.broadcast %cst_6 : f32 to vector<1x1x4096xf32>
    %12 = arith.addf %11, %10 : vector<1x1x4096xf32>
    %13 = arith.divf %11, %12 : vector<1x1x4096xf32>
    %14 = vector.broadcast %13 : vector<1x1x4096xf32> to vector<1x4x4096xf32>
    %15 = arith.mulf %0, %14 : vector<1x4x4096xf32>
    %c0_7 = arith.constant 0 : index
    %c0_8 = arith.constant 0 : index
    %c0_9 = arith.constant 0 : index
    %16 = vector.load %arg5[%c0_7, %c0_8, %c0_9] : memref<1x4x4096xf32, #tpu.memory_space<vmem>>, vector<1x4x4096xf32>
    tpu.vector_store %arg5[%c0_7, %c0_8, %c0_9], %15 {strides = array<i32>} : memref<1x4x4096xf32, #tpu.memory_space<vmem>>, vector<1x4x4096xf32>,
    return
  }
  func.func @transform_0(%arg0: i32, %arg1: i32) -> (i32, i32, i32) {
    %c0_i32 = arith.constant 0 : i32
    %c0_i32_0 = arith.constant 0 : i32
    %c0_i32_1 = arith.constant 0 : i32
    %c0_i32_2 = arith.constant 0 : i32
    return %c0_i32, %c0_i32_0, %c0_i32_1 : i32, i32, i32
  }
  func.func @transform_1(%arg0: i32, %arg1: i32) -> i32 {
    %c0_i32 = arith.constant 0 : i32
    %c0_i32_0 = arith.constant 0 : i32
    return %c0_i32 : i32
  }
  func.func @transform_2(%arg0: i32, %arg1: i32) -> (i32, i32, i32) {
    %c0_i32 = arith.constant 0 : i32
    %c0_i32_0 = arith.constant 0 : i32
    return %arg0, %c0_i32, %arg1 : i32, i32, i32
  }
  func.func @transform_3(%arg0: i32, %arg1: i32) -> (i32, i32, i32) {
    %c0_i32 = arith.constant 0 : i32
    %c0_i32_0 = arith.constant 0 : i32
    return %arg0, %c0_i32, %arg1 : i32, i32, i32
  }
}

</mosaic_0001>

<bundles_post_ra>
// kernel: spatial_se_layer_3d.1
= control target key start
LH: loop header
LB: loop body
LE: loop exit
PB: predicated region body
PF: predicated region fallthrough
CT: control target
= control target key end

     0   :  { %s1683_s14 = smov 0   ;;  %s1685_s15 = smov 0   ;;  %s3147_s0 = inlined_call_operand.vmem [shape: f32[1,4,1], index: 0, kind: input, shape index: {}]   ;;  %s3148_s1 = inlined_call_operand.<no memory space> [shape: f32[1], index: 1, kind: input, shape index: {}]   ;;  %s3149_s2 = inlined_call_operand.vmem [shape: f32[2,4,4096], index: 2, kind: input, shape index: {}]   ;;  %s3150_s3 = inlined_call_operand.vmem [shape: f32[2,4,4096], index: 3, kind: output, shape index: {}]  }
   0x1   :  { %8 = sst [smem:[#allocation2]] %s3148_s1  ;;  %s1687_s16 = smov 0  }
   0x2 LB: > { %s26_s1 = sadd.s32 1, %s1652_s15  ;;  %p1422_p0 = scmp.ge.s32.totalorder %s1656_s16, 1  ;;  %s1656_s16 = sphi %s1687_s16, %s14_s16   ;;  %s1652_s15 = sphi %s1685_s15, %s3343_s15   ;;  %s1648_s14 = sphi %s1683_s14, %s3342_s14  }
   0x3   : > { %p28_p1 = scmp.ge.s32.totalorder %s26_s1, 2  ;;  %p159_p2 = scmp.lt.s32.totalorder %s1656_s16, 3 }
   0x5   : > { %s3345_s1 = smov (%p28_p1, %s26_s1), 0  ;;  %p160_p3 = pnand %p1422_p0, %p159_p2 }
   0x7   : > { %163 = sbr.rel (%p160_p3) target bundleno = 364 (0x16c), region = 32 }
   0xc   : > { %v227_v0 = vld [vmem:[%s3147_s0] sm:$0xf]  ;;  %v1658_v1 = vmov 0   ;;  %p192_p4 = scmp.lt.s32.totalorder %s1648_s14, 1  ;;  %v1659_v2 = vmov 839922192  }
   0xd   : > { %1489 = vset.pattern.permute.xlu0 %v1658_v1  ;;  %v233_v3 = vunpack.c.l.s4 %v1659_v2  ;;  %vm3161_vm0 = vcmask 1043456   ;;  %s577_s23 = sld [smem:[#allocation2]] }
   0xe   : > { %230 = vperm.xlu0 %1489, %v227_v0   ;;  %s3347_s14 = smov (!%p192_p4, %s1648_s14), 1 }
   0xf   : > { %s1461_s19 = sshll.u32 %s3347_s14, 7  ;;  %v234_v4 = vunpack.c.0.s8 %v233_v3 }
  0x10   : > { %s1712_s22 = scalar_lea.vmem %s3149_s2, %s1461_s19  ;;  %s3037_s26 = scalar_lea.vmem %s3150_s3, %s1461_s19 }
  0x11   : > { %v211_v6 = vld [vmem:[%s1712_s22] sm:$0xff]  ;;  %v212_v7 = vld [vmem:[%s1712_s22 + $0x8] sm:$0xff]  ;;  %v213_v8 = vld [vmem:[%s1712_s22 + $0x10] sm:$0xff] }
  0x12   : > { %v214_v9 = vld [vmem:[%s1712_s22 + $0x18] sm:$0xff]  ;;  %v215_v15 = vld [vmem:[%s1712_s22 + $0x20] sm:$0xff]  ;;  %v216_v16 = vld [vmem:[%s1712_s22 + $0x28] sm:$0xff] }
  0x13   : > { %v217_v17 = vld [vmem:[%s1712_s22 + $0x30] sm:$0xff]  ;;  %v218_v18 = vld [vmem:[%s1712_s22 + $0x38] sm:$0xff]  ;;  %v219_v31 = vld [vmem:[%s1712_s22 + $0x40] sm:$0xff] }
  0x14   : > { %v220_v32 = vld [vmem:[%s1712_s22 + $0x48] sm:$0xff]  ;;  %v221_v33 = vld [vmem:[%s1712_s22 + $0x50] sm:$0xff]  ;;  %v222_v34 = vld [vmem:[%s1712_s22 + $0x58] sm:$0xff] }
  0x15   : > { %v223_v51 = vld [vmem:[%s1712_s22 + $0x60] sm:$0xff]  ;;  %v224_v52 = vld [vmem:[%s1712_s22 + $0x68] sm:$0xff]  ;;  %v225_v53 = vld [vmem:[%s1712_s22 + $0x70] sm:$0xff] }
  0x16   : > { %v226_v58 = vld [vmem:[%s1712_s22 + $0x78] sm:$0xff] }
  0x80   : > { %v231_v5 = vpop.permute.xlu0 %230 }
  0x81   : > { %v1718_v10 = vperm.slane %v231_v5, %v234_v4 }
  0x83   : > { %v237_v11 = vmul.f32 %v1718_v10, %v211_v6  ;;  %v238_v12 = vmul.f32 %v1718_v10, %v212_v7  ;;  %v239_v13 = vmul.f32 %v1718_v10, %v213_v8  ;;  %v240_v14 = vmul.f32 %v1718_v10, %v214_v9 }
  0x84   : > { %v241_v22 = vmul.f32 %v1718_v10, %v215_v15  ;;  %v242_v25 = vmul.f32 %v1718_v10, %v216_v16  ;;  %v243_v28 = vmul.f32 %v1718_v10, %v217_v17  ;;  %v244_v30 = vmul.f32 %v1718_v10, %v218_v18 }
  0x85   : > { %269 = vst [vmem:[#allocation1] ss:$2 sm:$0xff] %v237_v11  ;;  %v245_v38 = vmul.f32 %v1718_v10, %v219_v31  ;;  %v246_v41 = vmul.f32 %v1718_v10, %v220_v32  ;;  %v247_v44 = vmul.f32 %v1718_v10, %v221_v33  ;;  %v248_v46 = vmul.f32 %v1718_v10, %v222_v34 }
  0x86   : > { %271 = vst [vmem:[#allocation1 + $0x10] ss:$2 sm:$0xff] %v238_v12  ;;  %v249_v1 = vmul.f32 %v1718_v10, %v223_v51  ;;  %v250_v4 = vmul.f32 %v1718_v10, %v224_v52  ;;  %v251_v7 = vmul.f32 %v1718_v10, %v225_v53  ;;  %v252_v11 = vmul.f32 %v1718_v10, %v226_v58 }
  0x87   : > { %273 = vst [vmem:[#allocation1 + $0x20] ss:$2 sm:$0xff] %v239_v13 }
  0x88   : > { %275 = vst [vmem:[#allocation1 + $0x30] ss:$2 sm:$0xff] %v240_v14 }
  0x8c   : > { %v276_v19 = vld.sshfl [vmem:[#allocation1] sm:$0xff pattern:$0x75316420]  ;;  %v277_v20 = vld.sshfl [vmem:[#allocation1 + $0x8] sm:$0xff pattern:$0x75316420] }
  0x8d   : > { %v278_v21 = vld.sshfl [vmem:[#allocation1 + $0x10] sm:$0xff pattern:$0x75316420]  ;;  %v279_v23 = vld.sshfl [vmem:[#allocation1 + $0x18] sm:$0xff pattern:$0x75316420] }
  0x8e   : > { %v280_v24 = vld.sshfl [vmem:[#allocation1 + $0x20] sm:$0xff pattern:$0x75316420]  ;;  %v281_v26 = vld.sshfl [vmem:[#allocation1 + $0x28] sm:$0xff pattern:$0x75316420] }
  0x8f   : > { %v282_v27 = vld.sshfl [vmem:[#allocation1 + $0x30] sm:$0xff pattern:$0x75316420]  ;;  %v283_v29 = vld.sshfl [vmem:[#allocation1 + $0x38] sm:$0xff pattern:$0x75316420] }
  0x90   : > { %284 = vst [vmem:[#allocation1] ss:$2 sm:$0xff] %v241_v22  ;;  %v353_v47 = vsel %vm3161_vm0, %v276_v19, 0.0  ;;  %v360_v48 = vsel %vm3161_vm0, %v277_v20, 0.0  ;;  %v367_v49 = vsel %vm3161_vm0, %v278_v21, 0.0  ;;  %v374_v50 = vsel %vm3161_vm0, %v279_v23, 0.0 }
  0x91   : > { %285 = vst [vmem:[#allocation1 + $0x10] ss:$2 sm:$0xff] %v242_v25  ;;  %v354_v54 = vrot.slane %v353_v47, 4  ;;  %v361_v55 = vrot.slane %v360_v48, 4  ;;  %v368_v56 = vrot.slane %v367_v49, 4  ;;  %v375_v57 = vrot.slane %v374_v50, 4 }
  0x92   : > { %286 = vst [vmem:[#allocation1 + $0x20] ss:$2 sm:$0xff] %v243_v28  ;;  %v381_v60 = vsel %vm3161_vm0, %v280_v24, 0.0  ;;  %v388_v61 = vsel %vm3161_vm0, %v281_v26, 0.0  ;;  %v395_v62 = vsel %vm3161_vm0, %v282_v27, 0.0  ;;  %v402_v9 = vsel %vm3161_vm0, %v283_v29, 0.0 }
  0x93   : > { %287 = vst [vmem:[#allocation1 + $0x30] ss:$2 sm:$0xff] %v244_v30  ;;  %v355_v12 = vadd.f32 %v354_v54, %v353_v47  ;;  %v382_v13 = vrot.slane %v381_v60, 4  ;;  %v389_v14 = vrot.slane %v388_v61, 4  ;;  %v362_v15 = vadd.f32 %v361_v55, %v360_v48 }
  0x94   : > { %v396_v16 = vrot.slane %v395_v62, 4  ;;  %v403_v17 = vrot.slane %v402_v9, 4  ;;  %v369_v20 = vadd.f32 %v368_v56, %v367_v49  ;;  %v376_v21 = vadd.f32 %v375_v57, %v374_v50 }
  0x95   : > { %v356_v23 = vrot.slane %v355_v12, 2  ;;  %v383_v24 = vadd.f32 %v382_v13, %v381_v60  ;;  %v390_v10 = vadd.f32 %v389_v14, %v388_v61  ;;  %v363_v26 = vrot.slane %v362_v15, 2 }
  0x96   : > { %v397_v27 = vadd.f32 %v396_v16, %v395_v62  ;;  %v404_v30 = vadd.f32 %v403_v17, %v402_v9  ;;  %v370_v32 = vrot.slane %v369_v20, 2  ;;  %v377_v33 = vrot.slane %v376_v21, 2 }
  0x97   : > { %v288_v35 = vld.sshfl [vmem:[#allocation1] sm:$0xff pattern:$0x75316420]  ;;  %v289_v36 = vld.sshfl [vmem:[#allocation1 + $0x8] sm:$0xff pattern:$0x75316420] }
  0x98   : > { %v290_v37 = vld.sshfl [vmem:[#allocation1 + $0x10] sm:$0xff pattern:$0x75316420]  ;;  %v291_v39 = vld.sshfl [vmem:[#allocation1 + $0x18] sm:$0xff pattern:$0x75316420]  ;;  %v371_v49 = vadd.f32 %v370_v32, %v369_v20 }
  0x99   : > { %v1737_v40 = vld.sshfl [vmem:[#allocation1 + $0x20] sm:$0xff pattern:$0x75316420]  ;;  %v1740_v42 = vld.sshfl [vmem:[#allocation1 + $0x28] sm:$0xff pattern:$0x75316420] }
  0x9a   : > { %v1742_v43 = vld.sshfl [vmem:[#allocation1 + $0x30] sm:$0xff pattern:$0x75316420]  ;;  %v1745_v45 = vld.sshfl [vmem:[#allocation1 + $0x38] sm:$0xff pattern:$0x75316420] }
  0x9b   : > { %296 = vst [vmem:[#allocation1] ss:$2 sm:$0xff] %v245_v38  ;;  %v409_v18 = vsel %vm3161_vm0, %v288_v35, 0.0  ;;  %v416_v19 = vsel %vm3161_vm0, %v289_v36, 0.0  ;;  %v423_v22 = vsel %vm3161_vm0, %v290_v37, 0.0  ;;  %v430_v25 = vsel %vm3161_vm0, %v291_v39, 0.0 }
  0x9c   : > { %297 = vst [vmem:[#allocation1 + $0x10] ss:$2 sm:$0xff] %v246_v41  ;;  %v410_v28 = vrot.slane %v409_v18, 4  ;;  %v417_v29 = vrot.slane %v416_v19, 4  ;;  %v424_v31 = vrot.slane %v423_v22, 4  ;;  %v431_v34 = vrot.slane %v430_v25, 4 }
  0x9d   : > { %298 = vst [vmem:[#allocation1 + $0x20] ss:$2 sm:$0xff] %v247_v44  ;;  %v357_v35 = vadd.f32 %v356_v23, %v355_v12  ;;  %v384_v36 = vrot.slane %v383_v24, 2  ;;  %v391_v38 = vrot.slane %v390_v10, 2  ;;  %v364_v41 = vadd.f32 %v363_v26, %v362_v15 }
  0x9e   : > { %299 = vst [vmem:[#allocation1 + $0x30] ss:$2 sm:$0xff] %v248_v46  ;;  %v398_v44 = vrot.slane %v397_v27, 2  ;;  %v411_v37 = vadd.f32 %v410_v28, %v409_v18  ;;  %v418_v46 = vadd.f32 %v417_v29, %v416_v19  ;;  %v405_v47 = vrot.slane %v404_v30, 2 }
  0x9f   : > { %v425_v48 = vadd.f32 %v424_v31, %v423_v22  ;;  %v378_v39 = vadd.f32 %v377_v33, %v376_v21  ;;  %v432_v50 = vadd.f32 %v431_v34, %v430_v25  ;;  %v358_v51 = vrot.slane %v357_v35, 1 }
  0xa0   : > { %v385_v52 = vadd.f32 %v384_v36, %v383_v24  ;;  %v392_v53 = vadd.f32 %v391_v38, %v390_v10  ;;  %v365_v54 = vrot.slane %v364_v41, 1  ;;  %v399_v55 = vadd.f32 %v398_v44, %v397_v27 }
  0xa1   : > { %v412_v56 = vrot.slane %v411_v37, 2  ;;  %v419_v57 = vrot.slane %v418_v46, 2  ;;  %v406_v58 = vadd.f32 %v405_v47, %v404_v30  ;;  %v426_v60 = vrot.slane %v425_v48, 2 }
  0xa2   : > { %v1756_v59 = vld.sshfl [vmem:[#allocation1] sm:$0xff pattern:$0x75316420]  ;;  %v1761_v63 = vld.sshfl [vmem:[#allocation1 + $0x8] sm:$0xff pattern:$0x75316420]  ;;  %v1788_v22 = vstv %s577_s23 }
  0xa3   : > { %v1763_v0 = vld.sshfl [vmem:[#allocation1 + $0x10] sm:$0xff pattern:$0x75316420]  ;;  %v1766_v2 = vld.sshfl [vmem:[#allocation1 + $0x18] sm:$0xff pattern:$0x75316420]  ;;  %v413_v13 = vadd.f32 %v412_v56, %v411_v37  ;;  %v420_v14 = vadd.f32 %v419_v57, %v418_v46  ;;  %v427_v16 = vadd.f32 %v426_v60, %v425_v48 }
  0xa4   : > { %v1768_v3 = vld.sshfl [vmem:[#allocation1 + $0x20] sm:$0xff pattern:$0x75316420]  ;;  %v1771_v5 = vld.sshfl [vmem:[#allocation1 + $0x28] sm:$0xff pattern:$0x75316420] }
  0xa5   : > { %v1773_v6 = vld.sshfl [vmem:[#allocation1 + $0x30] sm:$0xff pattern:$0x75316420]  ;;  %v1776_v8 = vld.sshfl [vmem:[#allocation1 + $0x38] sm:$0xff pattern:$0x75316420] }
  0xa6   : > { %308 = vst [vmem:[#allocation1] ss:$2 sm:$0xff] %v249_v1  ;;  %v372_v61 = vrot.slane %v371_v49, 1  ;;  %v379_v62 = vrot.slane %v378_v39, 1  ;;  %v433_v1 = vrot.slane %v432_v50, 2  ;;  %v393_v9 = vrot.slane %v392_v53, 1 }
  0xa7   : > { %309 = vst [vmem:[#allocation1 + $0x10] ss:$2 sm:$0xff] %v250_v4  ;;  %v359_v4 = vadd.f32 %v358_v51, %v357_v35  ;;  %v400_v12 = vrot.slane %v399_v55, 1  ;;  %v407_v15 = vrot.slane %v406_v58, 1  ;;  %v437_v17 = vsel %vm3161_vm0, %v1737_v40, 0.0 }
  0xa8   : > { %310 = vst [vmem:[#allocation1 + $0x20] ss:$2 sm:$0xff] %v251_v7  ;;  %v386_v7 = vrot.slane %v385_v52, 1  ;;  %v444_v18 = vsel %vm3161_vm0, %v1740_v42, 0.0  ;;  %v373_v19 = vadd.f32 %v372_v61, %v371_v49  ;;  %v380_v20 = vadd.f32 %v379_v62, %v378_v39 }
  0xa9   : > { %311 = vst [vmem:[#allocation1 + $0x30] ss:$2 sm:$0xff] %v252_v11  ;;  %v366_v11 = vadd.f32 %v365_v54, %v364_v41  ;;  %v434_v21 = vadd.f32 %v433_v1, %v432_v50  ;;  %v394_v24 = vadd.f32 %v393_v9, %v392_v53  ;;  %v451_v10 = vsel %vm3161_vm0, %v1742_v43, 0.0 }
  0xaa   : > { %v387_v23 = vadd.f32 %v386_v7, %v385_v52  ;;  %v458_v25 = vsel %vm3161_vm0, %v1745_v45, 0.0  ;;  %v414_v26 = vrot.slane %v413_v13, 1  ;;  %v421_v27 = vrot.slane %v420_v14, 1 }
  0xab   : > { %v438_v28 = vrot.slane %v437_v17, 4  ;;  %v445_v40 = vrot.slane %v444_v18, 4  ;;  %v401_v29 = vadd.f32 %v400_v12, %v399_v55  ;;  %v408_v30 = vadd.f32 %v407_v15, %v406_v58 }
  0xac   : > { %v428_v42 = vrot.slane %v427_v16, 1  ;;  %v1795_v31 = vadd.f32 %v1788_v22, %v359_v4  ;;  %v435_v32 = vrot.slane %v434_v21, 1  ;;  %v452_v33 = vrot.slane %v451_v10, 4 }
  0xad   : > { %v459_v34 = vrot.slane %v458_v25, 4  ;;  %v465_v35 = vsel %vm3161_vm0, %v1756_v59, 0.0  ;;  %v472_v43 = vsel %vm3161_vm0, %v1761_v63, 0.0  ;;  %v1802_v45 = vadd.f32 %v1788_v22, %v366_v11  ;;  %v313_v60 = vld.sshfl [vmem:[#allocation1 + $0x8] sm:$0xff pattern:$0x75316420] }
  0xae   : > { %v1805_v36 = vadd.f32 %v1788_v22, %v373_v19  ;;  %v1808_v38 = vadd.f32 %v1788_v22, %v380_v20  ;;  %v415_v41 = vadd.f32 %v414_v26, %v413_v13  ;;  %v422_v44 = vadd.f32 %v421_v27, %v420_v14  ;;  %v314_v61 = vld.sshfl [vmem:[#allocation1 + $0x10] sm:$0xff pattern:$0x75316420]  ;;  %v315_v9 = vld.sshfl [vmem:[#allocation1 + $0x18] sm:$0xff pattern:$0x75316420] }
  0xaf   : > { %v439_v37 = vadd.f32 %v438_v28, %v437_v17  ;;  %v446_v46 = vadd.f32 %v445_v40, %v444_v18  ;;  %v429_v47 = vadd.f32 %v428_v42, %v427_v16  ;;  %v466_v48 = vrot.slane %v465_v35, 4 }
  0xb0   : > { %v479_v59 = vsel %vm3161_vm0, %v1763_v0, 0.0  ;;  %v486_v63 = vsel %vm3161_vm0, %v1766_v2, 0.0  ;;  %v436_v49 = vadd.f32 %v435_v32, %v434_v21  ;;  %v453_v39 = vadd.f32 %v452_v33, %v451_v10  ;;  %v312_v0 = vld.sshfl [vmem:[#allocation1] sm:$0xff pattern:$0x75316420] }
  0xb1   : > { %v460_v50 = vadd.f32 %v459_v34, %v458_v25  ;;  %v473_v51 = vrot.slane %v472_v43, 4  ;;  %v1815_v52 = vadd.f32 %v1788_v22, %v387_v23  ;;  %v1818_v53 = vadd.f32 %v1788_v22, %v394_v24 }
  0xb2   : > { %v1821_v54 = vadd.f32 %v1788_v22, %v401_v29  ;;  %v1824_v55 = vadd.f32 %v1788_v22, %v408_v30  ;;  %v480_v56 = vrot.slane %v479_v59, 4  ;;  %v487_v57 = vrot.slane %v486_v63, 4 }
  0xb3   : > { %v493_v2 = vsel %vm3161_vm0, %v1768_v3, 0.0  ;;  %v500_v58 = vsel %vm3161_vm0, %v1771_v5, 0.0  ;;  %v467_v62 = vadd.f32 %v466_v48, %v465_v35  ;;  %v1831_v1 = vadd.f32 %v1788_v22, %v415_v41 }
  0xb4   : > { %v1834_v4 = vadd.f32 %v1788_v22, %v422_v44  ;;  %v1837_v7 = vadd.f32 %v1788_v22, %v429_v47  ;;  %v440_v11 = vrot.slane %v439_v37, 2  ;;  %v474_v12 = vadd.f32 %v473_v51, %v472_v43 }
  0xb5   : > { %v507_v3 = vsel %vm3161_vm0, %v1773_v6, 0.0  ;;  %v1842_v5 = vadd.f32 %v1788_v22, %v436_v49  ;;  %v447_v13 = vrot.slane %v446_v46, 2  ;;  %v494_v14 = vrot.slane %v493_v2, 4 }
  0xb6   : > { %v501_v15 = vrot.slane %v500_v58, 4  ;;  %v514_v16 = vsel %vm3161_vm0, %v1776_v8, 0.0  ;;  %v454_v17 = vrot.slane %v453_v39, 2  ;;  %v461_v18 = vrot.slane %v460_v50, 2 }
  0xb7   : > { %v481_v19 = vadd.f32 %v480_v56, %v479_v59  ;;  %v488_v20 = vadd.f32 %v487_v57, %v486_v63  ;;  %v468_v21 = vrot.slane %v467_v62, 2  ;;  %v508_v23 = vrot.slane %v507_v3, 4 }
  0xb8   : > { %v521_v24 = vsel %vm3161_vm0, %v312_v0, 0.0  ;;  %v528_v10 = vsel %vm3161_vm0, %v313_v60, 0.0  ;;  %v475_v6 = vrot.slane %v474_v12, 2  ;;  %v515_v25 = vrot.slane %v514_v16, 4 }
  0xb9   : > { %v535_v26 = vsel %vm3161_vm0, %v314_v61, 0.0  ;;  %v542_v27 = vsel %vm3161_vm0, %v315_v9, 0.0  ;;  %v441_v28 = vadd.f32 %v440_v11, %v439_v37  ;;  %v448_v40 = vadd.f32 %v447_v13, %v446_v46 }
  0xba   : > { %v495_v29 = vadd.f32 %v494_v14, %v493_v2  ;;  %v502_v8 = vadd.f32 %v501_v15, %v500_v58  ;;  %v455_v30 = vadd.f32 %v454_v17, %v453_v39  ;;  %v462_v42 = vadd.f32 %v461_v18, %v460_v50 }
  0xbb   : > { %v522_v32 = vrot.slane %v521_v24, 4  ;;  %v529_v33 = vrot.slane %v528_v10, 4  ;;  %v482_v34 = vrot.slane %v481_v19, 2  ;;  %v509_v35 = vadd.f32 %v508_v23, %v507_v3  ;;  %v319_v23 = vld.sshfl [vmem:[#allocation1 + $0x38] sm:$0xff pattern:$0x75316420] }
  0xbc   : > { %v536_v43 = vrot.slane %v535_v26, 4  ;;  %v543_v41 = vrot.slane %v542_v27, 4  ;;  %v469_v44 = vadd.f32 %v468_v21, %v467_v62  ;;  %v476_v47 = vadd.f32 %v475_v6, %v474_v12  ;;  %v316_v62 = vld.sshfl [vmem:[#allocation1 + $0x20] sm:$0xff pattern:$0x75316420] }
  0xbd   : > { %v489_v48 = vrot.slane %v488_v20, 2  ;;  %v516_v59 = vadd.f32 %v515_v25, %v514_v16  ;;  %v442_v63 = vrot.slane %v441_v28, 1  ;;  %v449_v49 = vrot.slane %v448_v40, 1  ;;  %v317_v12 = vld.sshfl [vmem:[#allocation1 + $0x28] sm:$0xff pattern:$0x75316420] }
  0xbe   : > { %v496_v51 = vrot.slane %v495_v29, 2  ;;  %v503_v0 = vrot.slane %v502_v8, 2  ;;  %v456_v37 = vrot.slane %v455_v30, 1  ;;  %v463_v46 = vrot.slane %v462_v42, 1 }
  0xbf   : > { %v523_v56 = vadd.f32 %v522_v32, %v521_v24  ;;  %v530_v57 = vadd.f32 %v529_v33, %v528_v10  ;;  %v483_v39 = vadd.f32 %v482_v34, %v481_v19  ;;  %v510_v50 = vrot.slane %v509_v35, 2  ;;  %v318_v16 = vld.sshfl [vmem:[#allocation1 + $0x30] sm:$0xff pattern:$0x75316420] }
  0xc0   : > { %v537_v2 = vadd.f32 %v536_v43, %v535_v26  ;;  %v544_v58 = vadd.f32 %v543_v41, %v542_v27  ;;  %v470_v60 = vrot.slane %v469_v44, 1  ;;  %v477_v61 = vrot.slane %v476_v47, 1 }
  0xc1   : > { %v490_v9 = vadd.f32 %v489_v48, %v488_v20  ;;  %v517_v11 = vrot.slane %v516_v59, 2  ;;  %v1850_v3 = vadd.f32 %v442_v63, %v441_v28  ;;  %v1852_v13 = vadd.f32 %v449_v49, %v448_v40 }
  0xc2   : > { %v497_v14 = vadd.f32 %v496_v51, %v495_v29  ;;  %v504_v15 = vadd.f32 %v503_v0, %v502_v8  ;;  %v1854_v17 = vadd.f32 %v456_v37, %v455_v30  ;;  %v1856_v18 = vadd.f32 %v463_v46, %v462_v42 }
  0xc3   : > { %v524_v19 = vrot.slane %v523_v56, 2  ;;  %v531_v21 = vrot.slane %v530_v57, 2  ;;  %v484_v24 = vrot.slane %v483_v39, 1  ;;  %v511_v10 = vadd.f32 %v510_v50, %v509_v35 }
  0xc4   : > { %v538_v20 = vrot.slane %v537_v2, 2  ;;  %v545_v6 = vrot.slane %v544_v58, 2  ;;  %v1858_v25 = vadd.f32 %v470_v60, %v469_v44  ;;  %v1860_v26 = vadd.f32 %v477_v61, %v476_v47 }
  0xc5   : > { %v491_v27 = vrot.slane %v490_v9, 1  ;;  %v518_v28 = vadd.f32 %v517_v11, %v516_v59  ;;  %v498_v40 = vrot.slane %v497_v14, 1  ;;  %v505_v29 = vrot.slane %v504_v15, 1 }
  0xc6   : > { %v549_v8 = vsel %vm3161_vm0, %v316_v62, 0.0  ;;  %v556_v30 = vsel %vm3161_vm0, %v317_v12, 0.0  ;;  %v525_v42 = vadd.f32 %v524_v19, %v523_v56  ;;  %v532_v32 = vadd.f32 %v531_v21, %v530_v57 }
  0xc7   : > { %v563_v33 = vsel %vm3161_vm0, %v318_v16, 0.0  ;;  %v570_v34 = vsel %vm3161_vm0, %v319_v23, 0.0  ;;  %v1866_v35 = vadd.f32 %v484_v24, %v483_v39  ;;  %v512_v43 = vrot.slane %v511_v10, 1 }
  0xc8   : > { %v539_v41 = vadd.f32 %v538_v20, %v537_v2  ;;  %v546_v44 = vadd.f32 %v545_v6, %v544_v58  ;;  %v1868_v47 = vadd.f32 %v491_v27, %v490_v9  ;;  %v519_v48 = vrot.slane %v518_v28, 1 }
  0xc9   : > { %v550_v59 = vrot.slane %v549_v8, 4  ;;  %v557_v63 = vrot.slane %v556_v30, 4  ;;  %v1870_v49 = vadd.f32 %v498_v40, %v497_v14  ;;  %v564_v51 = vrot.slane %v563_v33, 4 }
  0xca   : > { %v571_v0 = vrot.slane %v570_v34, 4  ;;  %v1427_v37 = vmul.f32 -1.442695, %v1795_v31  ;;  %v1873_v46 = vadd.f32 %v505_v29, %v504_v15  ;;  %v526_v56 = vrot.slane %v525_v42, 1 }
  0xcb   : > { %v533_v57 = vrot.slane %v532_v32, 1  ;;  %v1428_v39 = vmul.f32 -1.442695, %v1802_v45  ;;  %v1876_v50 = vadd.f32 %v512_v43, %v511_v10  ;;  %v540_v2 = vrot.slane %v539_v41, 1 }
  0xcc   : > { %v547_v58 = vrot.slane %v546_v44, 1  ;;  %v1429_v60 = vmul.f32 -1.442695, %v1805_v36  ;;  %v1879_v61 = vadd.f32 %v519_v48, %v518_v28  ;;  %v551_v9 = vadd.f32 %v550_v59, %v549_v8 }
  0xcd   : > { %v558_v11 = vadd.f32 %v557_v63, %v556_v30  ;;  %v1430_v62 = vmul.f32 -1.442695, %v1808_v38  ;;  %v565_v12 = vadd.f32 %v564_v51, %v563_v33  ;;  %v572_v31 = vadd.f32 %v571_v0, %v570_v34 }
  0xce   : > { %1490 = vpow2.f32 %v1427_v37  ;;  %v1431_v14 = vmul.f32 -1.442695, %v1815_v52  ;;  %v1883_v15 = vadd.f32 %v526_v56, %v525_v42  ;;  %v1885_v45 = vadd.f32 %v533_v57, %v532_v32 }
  0xcf   : > { %1492 = vpow2.f32 %v1428_v39  ;;  %v1432_v16 = vmul.f32 -1.442695, %v1818_v53  ;;  %v1888_v19 = vadd.f32 %v540_v2, %v539_v41  ;;  %v1890_v36 = vadd.f32 %v547_v58, %v546_v44 }
  0xd0   : > { %1494 = vpow2.f32 %v1429_v60  ;;  %v1433_v21 = vmul.f32 -1.442695, %v1821_v54  ;;  %v552_v38 = vrot.slane %v551_v9, 2  ;;  %v559_v23 = vrot.slane %v558_v11, 2 }
  0xd1   : > { %1496 = vpow2.f32 %v1430_v62  ;;  %v1434_v24 = vmul.f32 -1.442695, %v1824_v55  ;;  %v566_v52 = vrot.slane %v565_v12, 2  ;;  %v591_v10 = vadd.f32 %v1788_v22, %v1850_v3 }
  0xd2   : > { %1498 = vpow2.f32 %v1431_v14  ;;  %v1435_v20 = vmul.f32 -1.442695, %v1831_v1  ;;  %v573_v53 = vrot.slane %v572_v31, 2  ;;  %v592_v6 = vadd.f32 %v1788_v22, %v1852_v13 }
  0xd3   : > { %1500 = vpow2.f32 %v1432_v16  ;;  %v1436_v27 = vmul.f32 -1.442695, %v1834_v4  ;;  %v593_v28 = vadd.f32 %v1788_v22, %v1854_v17  ;;  %v594_v55 = vadd.f32 %v1788_v22, %v1856_v18 }
  0xd4   : > { %v1900_v54 = vpop.eup %1490  ;;  %1502 = vpow2.f32 %v1433_v21  ;;  %v1437_v3 = vmul.f32 -1.442695, %v1837_v7  ;;  %v553_v1 = vadd.f32 %v552_v38, %v551_v9  ;;  %v560_v29 = vadd.f32 %v559_v23, %v558_v11 }
  0xd5   : > { %v1907_v40 = vpop.eup %1492  ;;  %1504 = vpow2.f32 %v1434_v24  ;;  %v1438_v13 = vmul.f32 -1.442695, %v1842_v5  ;;  %v567_v4 = vadd.f32 %v566_v52, %v565_v12  ;;  %v595_v30 = vadd.f32 %v1788_v22, %v1858_v25 }
  0xd6   : > { %v1910_v8 = vpop.eup %1494  ;;  %1506 = vpow2.f32 %v1435_v20  ;;  %v1439_v17 = vmul.f32 -1.442695, %v591_v10  ;;  %v574_v18 = vadd.f32 %v573_v53, %v572_v31  ;;  %v596_v7 = vadd.f32 %v1788_v22, %v1860_v26 }
  0xd7   : > { %v1914_v42 = vpop.eup %1496  ;;  %1508 = vpow2.f32 %v1436_v27  ;;  %v1440_v32 = vmul.f32 -1.442695, %v592_v6  ;;  %v597_v5 = vadd.f32 %v1788_v22, %v1866_v35  ;;  %v598_v34 = vadd.f32 %v1788_v22, %v1868_v47 }
  0xd8   : > { %v1918_v33 = vpop.eup %1498  ;;  %1510 = vpow2.f32 %v1437_v3  ;;  %v1441_v25 = vmul.f32 -1.442695, %v593_v28  ;;  %v554_v41 = vrot.slane %v553_v1, 1  ;;  %v561_v44 = vrot.slane %v560_v29, 1 }
  0xd9   : > { %v1924_v43 = vpop.eup %1500  ;;  %1512 = vpow2.f32 %v1438_v13  ;;  %v1442_v48 = vmul.f32 -1.442695, %v594_v55  ;;  %v568_v26 = vrot.slane %v567_v4, 1  ;;  %v599_v63 = vadd.f32 %v1788_v22, %v1870_v49 }
  0xda   : > { %v1926_v59 = vpop.eup %1502  ;;  %1514 = vpow2.f32 %v1439_v17  ;;  %v1443_v51 = vmul.f32 -1.442695, %v595_v30  ;;  %v575_v0 = vrot.slane %v574_v18, 1  ;;  %v600_v47 = vadd.f32 %v1788_v22, %v1873_v46 }
  0xdb   : > { %v1930_v35 = vpop.eup %1504  ;;  %1516 = vpow2.f32 %v1440_v32  ;;  %v1444_v37 = vmul.f32 -1.442695, %v596_v7  ;;  %v601_v57 = vadd.f32 %v1788_v22, %v1876_v50  ;;  %v602_v39 = vadd.f32 %v1788_v22, %v1879_v61 }
  0xdc   : > { %v1934_v56 = vpop.eup %1506  ;;  %1518 = vpow2.f32 %v1441_v25  ;;  %v1445_v49 = vmul.f32 -1.442695, %v597_v5  ;;  %v555_v58 = vadd.f32 %v554_v41, %v553_v1  ;;  %v562_v60 = vadd.f32 %v561_v44, %v560_v29 }
  0xdd   : > { %v1940_v2 = vpop.eup %1508  ;;  %1520 = vpow2.f32 %v1442_v48  ;;  %v1446_v9 = vmul.f32 -1.442695, %v598_v34  ;;  %v569_v46 = vadd.f32 %v568_v26, %v567_v4  ;;  %v603_v62 = vadd.f32 %v1788_v22, %v1883_v15 }
  0xde   : > { %v1942_v11 = vpop.eup %1510  ;;  %1522 = vpow2.f32 %v1443_v51  ;;  %v1447_v12 = vmul.f32 -1.442695, %v599_v63  ;;  %v576_v31 = vadd.f32 %v575_v0, %v574_v18  ;;  %v604_v61 = vadd.f32 %v1788_v22, %v1885_v45 }
  0xdf   : > { %v1946_v50 = vpop.eup %1512  ;;  %1524 = vpow2.f32 %v1444_v37  ;;  %v1448_v14 = vmul.f32 -1.442695, %v600_v47  ;;  %v605_v21 = vadd.f32 %v1788_v22, %v1888_v19  ;;  %v606_v38 = vadd.f32 %v1788_v22, %v1890_v36 }
  0xe0   : > { %v1950_v16 = vpop.eup %1514  ;;  %1526 = vpow2.f32 %v1445_v49  ;;  %v1449_v15 = vmul.f32 -1.442695, %v601_v57  ;;  %v607_v24 = vadd.f32 %v1788_v22, %v555_v58  ;;  %v608_v52 = vadd.f32 %v1788_v22, %v562_v60 }
  0xe1   : > { %v1956_v23 = vpop.eup %1516  ;;  %1528 = vpow2.f32 %v1446_v9  ;;  %v1450_v45 = vmul.f32 -1.442695, %v602_v39  ;;  %v609_v20 = vadd.f32 %v1788_v22, %v569_v46  ;;  %v1451_v53 = vmul.f32 -1.442695, %v603_v62 }
  0xe2   : > { %v1960_v10 = vpop.eup %1518  ;;  %1530 = vpow2.f32 %v1447_v12  ;;  %v1964_v19 = vadd.f32 1.0, %v1900_v54  ;;  %v610_v6 = vadd.f32 %v1788_v22, %v576_v31  ;;  %v1452_v27 = vmul.f32 -1.442695, %v604_v61 }
  0xe3   : > { %v1966_v36 = vpop.eup %1520  ;;  %1532 = vpow2.f32 %v1448_v14  ;;  %v1970_v28 = vadd.f32 1.0, %v1907_v40  ;;  %v1453_v3 = vmul.f32 -1.442695, %v605_v21  ;;  %v1454_v29 = vmul.f32 -1.442695, %v606_v38 }
  0xe4   : > { %v1972_v55 = vpop.eup %1522  ;;  %1534 = vpow2.f32 %v1449_v15  ;;  %v1455_v13 = vmul.f32 -1.442695, %v607_v24  ;;  %v1975_v54 = vadd.f32 1.0, %v1910_v8  ;;  %v1456_v30 = vmul.f32 -1.442695, %v608_v52 }
  0xe5   : > { %v1525_v1 = vpop.eup %1524  ;;  %1536 = vpow2.f32 %v1450_v45  ;;  %v1457_v22 = vmul.f32 -1.442695, %v609_v20  ;;  %v750_v17 = vand.u32 2147483648, %v1964_v19  ;;  %v1978_v40 = vmul.f32 -1.442695, %v610_v6 }
  0xe6   : > { %v1527_v4 = vpop.eup %1526  ;;  %1538 = vpow2.f32 %v1451_v53  ;;  %v1981_v7 = vadd.f32 1.0, %v1914_v42  ;;  %v765_v32 = vand.u32 2147483648, %v1970_v28  ;;  %v1985_v8 = vadd.f32 1.0, %v1918_v33 }
  0xe7   : > { %v1529_v18 = vpop.eup %1528  ;;  %1540 = vpow2.f32 %v1452_v27  ;;  %v1988_v34 = vadd.f32 1.0, %v1924_v43  ;;  %v1992_v44 = vadd.f32 1.0, %v1926_v59  ;;  %v780_v48 = vand.u32 2147483648, %v1975_v54 }
  0xe8   : > { %v1531_v5 = vpop.eup %1530  ;;  %1542 = vpow2.f32 %v1453_v3  ;;  %v1997_v63 = vadd.f32 1.0, %v1930_v35  ;;  %v2000_v33 = vadd.f32 1.0, %v1934_v56  ;;  %v2002_v43 = vor.u32 1.1754944e-38, %v750_v17 }
  0xe9   : > { %v1533_v41 = vpop.eup %1532  ;;  %1544 = vpow2.f32 %v1454_v29  ;;  %v2005_v0 = vor.u32 1.1754944e-38, %v765_v32  ;;  %v795_v47 = vand.u32 2147483648, %v1981_v7  ;;  %v2010_v57 = vadd.f32 1.0, %v1940_v2 }
  0xea   : > { %v1535_v26 = vpop.eup %1534  ;;  %1546 = vpow2.f32 %v1455_v13  ;;  %v2013_v35 = vadd.f32 1.0, %v1942_v11  ;;  %v2018_v49 = vadd.f32 1.0, %v1946_v50  ;;  %v2021_v58 = vor.u32 1.1754944e-38, %v780_v48 }
  0xeb   : > { %v1537_v51 = vpop.eup %1536  ;;  %1548 = vrcp.f32 %v1964_v19  ;;  %v810_v60 = vand.u32 2147483648, %v1985_v8  ;;  %v2025_v2 = vadd.f32 1.0, %v1950_v16  ;;  %v2028_v11 = vadd.f32 1.0, %v1956_v23 }
  0xec   : > { %v1539_v37 = vpop.eup %1538  ;;  %1550 = vrcp.f32 %v1970_v28  ;;  %v825_v46 = vand.u32 2147483648, %v1988_v34  ;;  %v2033_v12 = vadd.f32 1.0, %v1960_v10  ;;  %v2035_v50 = vor.u32 1.1754944e-38, %v795_v47 }
  0xed   : > { %v1541_v39 = vpop.eup %1540  ;;  %1552 = vrcp.f32 %v1975_v54  ;;  %v2039_v14 = vadd.f32 1.0, %v1966_v36  ;;  %v840_v21 = vand.u32 2147483648, %v1992_v44  ;;  %v2047_v15 = vadd.f32 1.0, %v1972_v55 }
  0xee   : > { %v1543_v9 = vpop.eup %1542  ;;  %1554 = vrcp.f32 %v1981_v7  ;;  %v2049_v23 = vadd.f32 1.0, %v1525_v1  ;;  %v2051_v24 = vor.u32 1.1754944e-38, %v810_v60  ;;  %v2056_v45 = vadd.f32 1.0, %v1527_v4 }
  0xef   : > { %v1545_v62 = vpop.eup %1544  ;;  %1556 = vpow2.f32 %v1456_v30  ;;  %v2058_v10 = vor.u32 1.1754944e-38, %v825_v46  ;;  %v855_v20 = vand.u32 2147483648, %v1997_v63  ;;  %v2064_v36 = vadd.f32 1.0, %v1529_v18 }
  0xf0   : > { %v1547_v61 = vpop.eup %1546  ;;  %1558 = vrcp.f32 %v1985_v8  ;;  %v2066_v6 = vadd.f32 1.0, %v1531_v5  ;;  %v2072_v3 = vadd.f32 1.0, %v1533_v41  ;;  %v2074_v1 = vor.u32 1.1754944e-38, %v840_v21 }
  0xf1   : > { %v2044_v38 = vpop.eup %1548  ;;  %1560 = vrcp.f32 %v1988_v34  ;;  %3165 = vst [vmem:[#allocation3_spill] sm:$0xff] %v2064_v36  ;;  %v2077_v4 = vadd.f32 1.0, %v1535_v26  ;;  %v2079_v30 = vadd.f32 1.0, %v1537_v51  ;;  %v870_v17 = vand.u32 2147483648, %v2000_v33 }
  0xf2   : > { %v2054_v52 = vpop.eup %1550  ;;  %1562 = vrcp.f32 %v1992_v44  ;;  %3166 = vst [vmem:[#allocation4_spill] sm:$0xff] %v2066_v6  ;;  %v2091_v5 = vor.u32 1.1754944e-38, %v855_v20  ;;  %v885_v51 = vand.u32 2147483648, %v2010_v57  ;;  %v2102_v60 = vadd.f32 1.0, %v1539_v37 }
  0xf3   : > { %v2062_v53 = vpop.eup %1552  ;;  %1564 = vpow2.f32 %v1457_v22  ;;  %3167 = vst [vmem:[#allocation5_spill] sm:$0xff] %v2072_v3  ;;  %v740_v22 = vmul.f32 %v2044_v38, %v1964_v19  ;;  %v2104_v46 = vadd.f32 1.0, %v1541_v39  ;;  %v2108_v29 = vadd.f32 1.0, %v1543_v9 }
  0xf4   : > { %v2069_v55 = vpop.eup %1554  ;;  %1566 = vpow2.f32 %v1978_v40  ;;  %3168 = vst [vmem:[#allocation6_spill] sm:$0xff] %v2077_v4  ;;  %v755_v40 = vmul.f32 %v2054_v52, %v1970_v28  ;;  %v770_v32 = vmul.f32 %v2062_v53, %v1975_v54  ;;  %v2110_v27 = vadd.f32 1.0, %v1545_v62 }
  0xf5   : > { %v1557_v13 = vpop.eup %1556  ;;  %3169 = vst [vmem:[#allocation7_spill] sm:$0xff] %v2079_v30  ;;  %1568 = vrcp.f32 %v1997_v63  ;;  %v785_v48 = vmul.f32 %v2069_v55, %v1981_v7  ;;  %v741_v16 = vsub.f32 1.0, %v740_v22  ;;  %v2112_v31 = vor.u32 1.1754944e-38, %v870_v17 }
  0xf6   : > { %v2084_v18 = vpop.eup %1558  ;;  %1570 = vrcp.f32 %v2000_v33  ;;  %3170 = vst [vmem:[#allocation8_spill] sm:$0xff] %v2102_v60  ;;  %v2114_v56 = vadd.f32 1.0, %v1547_v61  ;;  %vm744_vm1 = vweird.f32 %v1964_v19  ;;  %v756_v37 = vsub.f32 1.0, %v755_v40 }
  0xf7   : > { %v2093_v41 = vpop.eup %1560  ;;  %3171 = vst [vmem:[#allocation9_spill] sm:$0xff] %v2104_v46  ;;  %1572 = vrcp.f32 %v2010_v57  ;;  %v771_v39 = vsub.f32 1.0, %v770_v32  ;;  %v800_v59 = vmul.f32 %v2084_v18, %v1985_v8  ;;  %vm759_vm2 = vweird.f32 %v1970_v28 }
  0xf8   : > { %v2100_v47 = vpop.eup %1562  ;;  %3172 = vst [vmem:[#allocation10_spill] sm:$0xff] %v2108_v29  ;;  %v786_v21 = vsub.f32 1.0, %v785_v48  ;;  %v815_v9 = vmul.f32 %v2093_v41, %v1988_v34  ;;  %v2124_v22 = vor.u32 1.1754944e-38, %v885_v51  ;;  %v2128_v17 = vadd.f32 1.0, %v1557_v13 }
  0xf9   : > { %v1565_v20 = vpop.eup %1564  ;;  %3173 = vst [vmem:[#allocation11_spill] sm:$0xff] %v2110_v27  ;;  %v830_v62 = vmul.f32 %v2100_v47, %v1992_v44  ;;  %vm774_vm3 = vweird.f32 %v1975_v54  ;;  %v900_v48 = vand.u32 2147483648, %v2013_v35  ;;  %vm789_vm4 = vweird.f32 %v1981_v7 }
  0xfa   : > { %v1567_v26 = vpop.eup %1566  ;;  %3174 = vst [vmem:[#allocation12_spill] sm:$0xff] %v2114_v56  ;;  %v2130_v40 = vadd.f32 1.0, %v1565_v20  ;;  %v742_v56 = vmul.f32 %v2044_v38, %v741_v16  ;;  %1574 = vrcp.f32 %v2013_v35  ;;  %v757_v20 = vmul.f32 %v2054_v52, %v756_v37 }
  0xfb   : > { %v2126_v61 = vpop.eup %1568  ;;  %3175 = vst [vmem:[#allocation13_spill] sm:$0xff] %v2128_v17  ;;  %v2137_v25 = vadd.f32 1.0, %v1567_v26  ;;  %v772_v32 = vmul.f32 %v2062_v53, %v771_v39  ;;  %v915_v17 = vand.u32 2147483648, %v2018_v49  ;;  %vm745_vm5 = vweird.f32 %v2044_v38 }
  0xfc   : > { %3176 = vst [vmem:[#allocation14_spill] sm:$0xff] %v2130_v40  ;;  %v2135_v42 = vpop.eup %1570  ;;  %v801_v40 = vsub.f32 1.0, %v800_v59  ;;  %v3178_v26 = vand.u32 2147483647, %v1964_v19  ;;  %vm804_vm7 = vweird.f32 %v1985_v8  ;;  %v816_v13 = vsub.f32 1.0, %v815_v9  ;;  %vm2198_vm15 = vmor %vm744_vm1, %vm745_vm5 }
  0xfd   : > { %3177 = vst [vmem:[#allocation15_spill] sm:$0xff] %v2137_v25  ;;  %v2143_v51 = vpop.eup %1572  ;;  %v787_v25 = vmul.f32 %v2069_v55, %v786_v21  ;;  %v831_v27 = vsub.f32 1.0, %v830_v62  ;;  %vm760_vm8 = vweird.f32 %v2054_v52  ;;  %v3181_v59 = vand.u32 2147483647, %v1970_v28 }
  0xfe   : > { %vm2151_vm6 = vcmp.eq.f32.partialorder %v3178_v26, 8.507059e+37  ;;  %v3184_v39 = vand.u32 2147483647, %v1975_v54  ;;  %v845_v21 = vmul.f32 %v2126_v61, %v1997_v63  ;;  %v860_v9 = vmul.f32 %v2135_v42, %v2000_v33  ;;  %vm2210_vm14 = vmor %vm759_vm2, %vm760_vm8 }
  0xff   : > { %vm2160_vm9 = vcmp.eq.f32.partialorder %v3181_v59, 8.507059e+37  ;;  %1576 = vrcp.f32 %v2018_v49  ;;  %v743_v62 = vadd.f32 %v2044_v38, %v742_v56  ;;  %vm775_vm12 = vweird.f32 %v2062_v53 }
 0x100   : > { %vm2166_vm10 = vcmp.eq.f32.partialorder %v3184_v39, 8.507059e+37  ;;  %v3187_v59 = vand.u32 2147483647, %v1981_v7  ;;  %v875_v29 = vmul.f32 %v2143_v51, %v2010_v57  ;;  %1578 = vrcp.f32 %v2025_v2  ;;  %v2192_v30 = vpop.eup %1574  ;;  %vm2231_vm2 = vmor %vm774_vm3, %vm775_vm12 }
 0x101   : > { %v758_v46 = vadd.f32 %v2054_v52, %v757_v20  ;;  %v773_v60 = vadd.f32 %v2062_v53, %v772_v32  ;;  %v802_v56 = vmul.f32 %v2084_v18, %v801_v40  ;;  %1580 = vrcp.f32 %v2028_v11 }
 0x102   : > { %vm2180_vm13 = vcmp.eq.f32.partialorder %v3187_v59, 8.507059e+37  ;;  %v788_v4 = vadd.f32 %v2069_v55, %v787_v25  ;;  %vm790_vm0 = vweird.f32 %v2069_v55  ;;  %v817_v32 = vmul.f32 %v2093_v41, %v816_v13 }
 0x103   : > { %v832_v40 = vmul.f32 %v2100_v47, %v831_v27  ;;  %v3194_v19 = vand.u32 2147483647, %v1985_v8  ;;  %v846_v25 = vsub.f32 1.0, %v845_v21  ;;  %v861_v6 = vsub.f32 1.0, %v860_v9  ;;  %vm2256_vm3 = vmor %vm789_vm4, %vm790_vm0 }
 0x104   : > { %v2220_v36 = vor.u32 1.1754944e-38, %v900_v48  ;;  %v2222_v13 = vor.u32 1.1754944e-38, %v915_v17  ;;  %v747_v28 = vsel %vm2198_vm15, %v2044_v38, %v743_v62  ;;  %vm805_vm5 = vweird.f32 %v2084_v18 }
 0x105   : > { %vm2216_vm1 = vcmp.eq.f32.partialorder %v3194_v19, 8.507059e+37  ;;  %vm820_vm8 = vweird.f32 %v2093_v41  ;;  %v3199_v48 = vand.u32 2147483647, %v1988_v34  ;;  %vm849_vm15 = vweird.f32 %v1997_v63  ;;  %v2244_v21 = vpop.eup %1576 }
 0x106   : > { %v876_v38 = vsub.f32 1.0, %v875_v29  ;;  %v762_v54 = vsel %vm2210_vm14, %v2054_v52, %v758_v46  ;;  %v777_v9 = vsel %vm2231_vm2, %v2062_v53, %v773_v60  ;;  %v803_v29 = vadd.f32 %v2084_v18, %v802_v56  ;;  %v2270_v53 = vpop.eup %1578  ;;  %vm2290_vm2 = vmor %vm804_vm7, %vm805_vm5 }
 0x107   : > { %vm2239_vm11 = vcmp.eq.f32.partialorder %v3199_v48, 8.507059e+37  ;;  %v3204_v59 = vand.u32 2147483647, %v1992_v44  ;;  %vm864_vm14 = vweird.f32 %v2000_v33  ;;  %v890_v52 = vmul.f32 %v2192_v30, %v2013_v35  ;;  %v2279_v56 = vpop.eup %1580  ;;  %v3242_v48 = vld [vmem:[#allocation3_spill] sm:$0xff] }
 0x108   : > { %v792_v7 = vsel %vm2256_vm3, %v2069_v55, %v788_v4  ;;  %v818_v60 = vadd.f32 %v2093_v41, %v817_v32  ;;  %v833_v46 = vadd.f32 %v2100_v47, %v832_v40  ;;  %vm835_vm0 = vweird.f32 %v2100_v47 }
 0x109   : > { %vm2263_vm12 = vcmp.eq.f32.partialorder %v3204_v59, 8.507059e+37  ;;  %vm879_vm4 = vweird.f32 %v2010_v57  ;;  %v2284_v20 = vsel %vm2151_vm6, %v2002_v43, %v747_v28  ;;  %v847_v4 = vmul.f32 %v2126_v61, %v846_v25 }
 0x10a   : > { %v862_v32 = vmul.f32 %v2135_v42, %v861_v6  ;;  %1582 = vrcp.f32 %v2033_v12  ;;  %v2300_v16 = vsel %vm2160_vm9, %v2005_v0, %v762_v54  ;;  %v2305_v43 = vsel %vm2166_vm10, %v2021_v58, %v777_v9 }
 0x10b   : > { %vm3209_vm6 = vweird.f32 %v1988_v34  ;;  %v877_v6 = vmul.f32 %v2143_v51, %v876_v38  ;;  %v905_v37 = vmul.f32 %v2244_v21, %v2018_v49  ;;  %v2321_v0 = vsel %vm2180_vm13, %v2035_v50, %v792_v7 }
 0x10c   : > { %vm2311_vm7 = vmor %vm3209_vm6, %vm820_vm8  ;;  %v807_v58 = vsel %vm2290_vm2, %v2084_v18, %v803_v29  ;;  %vm3212_vm9 = vweird.f32 %v1992_v44  ;;  %v3215_v26 = vand.u32 2147483647, %v1997_v63  ;;  %v891_v50 = vsub.f32 1.0, %v890_v52 }
 0x10d   : > { %vm2330_vm10 = vmor %vm3212_vm9, %vm835_vm0  ;;  %v920_v39 = vmul.f32 %v2270_v53, %v2025_v2  ;;  %v822_v18 = vsel %vm2311_vm7, %v2093_v41, %v818_v60  ;;  %vm850_vm13 = vweird.f32 %v2126_v61  ;;  %v3218_v25 = vand.u32 2147483647, %v2000_v33 }
 0x10e   : > { %vm2336_vm5 = vcmp.eq.f32.partialorder %v3215_v26, 8.507059e+37  ;;  %v837_v44 = vsel %vm2330_vm10, %v2100_v47, %v833_v46  ;;  %v3221_v27 = vand.u32 2147483647, %v2010_v57  ;;  %v935_v41 = vmul.f32 %v2279_v56, %v2028_v11  ;;  %vm2386_vm7 = vmor %vm849_vm15, %vm850_vm13 }
 0x10f   : > { %vm2351_vm8 = vcmp.eq.f32.partialorder %v3218_v25, 8.507059e+37  ;;  %v848_v38 = vadd.f32 %v2126_v61, %v847_v4  ;;  %v863_v47 = vadd.f32 %v2135_v42, %v862_v32  ;;  %vm865_vm0 = vweird.f32 %v2135_v42 }
 0x110   : > { %vm2357_vm3 = vcmp.eq.f32.partialorder %v3221_v27, 8.507059e+37  ;;  %vm894_vm2 = vweird.f32 %v2013_v35  ;;  %1584 = vrcp.f32 %v2039_v14  ;;  %v2371_v54 = vsel %vm2216_vm1, %v2051_v24, %v807_v58  ;;  %v2375_v29 = vpop.eup %1582 }
 0x111   : > { %v878_v9 = vadd.f32 %v2143_v51, %v877_v6  ;;  %vm880_vm6 = vweird.f32 %v2143_v51  ;;  %v906_v62 = vsub.f32 1.0, %v905_v37  ;;  %v2380_v59 = vsel %vm2239_vm11, %v2058_v10, %v822_v18  ;;  %vm2399_vm11 = vmor %vm864_vm14, %vm865_vm0  ;;  %v3245_v10 = vld [vmem:[#allocation4_spill] sm:$0xff] }
 0x112   : > { %v892_v24 = vmul.f32 %v2192_v30, %v891_v50  ;;  %v921_v52 = vsub.f32 1.0, %v920_v39  ;;  %1586 = vrcp.f32 %v2047_v15  ;;  %v2395_v7 = vsel %vm2263_vm12, %v2074_v1, %v837_v44  ;;  %vm2416_vm12 = vmor %vm879_vm4, %vm880_vm6 }
 0x113   : > { %vm895_vm1 = vweird.f32 %v2192_v30  ;;  %vm909_vm15 = vweird.f32 %v2018_v49  ;;  %v930_v63 = vand.u32 2147483648, %v2025_v2  ;;  %v936_v17 = vsub.f32 1.0, %v935_v41 }
 0x114   : > { %v852_v60 = vsel %vm2386_vm7, %v2126_v61, %v848_v38  ;;  %v867_v1 = vsel %vm2399_vm11, %v2135_v42, %v863_v47  ;;  %v3230_v19 = vand.u32 2147483647, %v2013_v35  ;;  %v928_v61 = vand.u32 2147483647, %v2025_v2  ;;  %vm2472_vm13 = vmor %vm894_vm2, %vm895_vm1 }
 0x115   : > { %v943_v55 = vand.u32 2147483647, %v2028_v11  ;;  %v882_v42 = vsel %vm2416_vm12, %v2143_v51, %v878_v9  ;;  %v907_v57 = vmul.f32 %v2244_v21, %v906_v62  ;;  %v950_v4 = vmul.f32 %v2375_v29, %v2033_v12 }
 0x116   : > { %vm2422_vm14 = vcmp.eq.f32.partialorder %v3230_v19, 8.507059e+37  ;;  %1588 = vrcp.f32 %v2049_v23  ;;  %v2435_v32 = vpop.eup %1584  ;;  %v893_v8 = vadd.f32 %v2192_v30, %v892_v24  ;;  %v922_v6 = vmul.f32 %v2270_v53, %v921_v52 }
 0x117   : > { %vm924_vm4 = vweird.f32 %v2025_v2  ;;  %1590 = vrcp.f32 %v2056_v45  ;;  %v2444_v51 = vsel %vm2336_vm5, %v2091_v5, %v852_v60  ;;  %v3233_v37 = vand.u32 2147483647, %v2018_v49 }
 0x118   : > { %v931_v34 = vor.u32 1.1754944e-38, %v930_v63  ;;  %v937_v26 = vmul.f32 %v2279_v56, %v936_v17  ;;  %vm939_vm10 = vweird.f32 %v2028_v11  ;;  %v2454_v50 = vpop.eup %1586  ;;  %v2459_v39 = vsel %vm2351_vm8, %v2112_v31, %v867_v1 }
 0x119   : > { %vm2448_vm9 = vcmp.eq.f32.partialorder %v3233_v37, 8.507059e+37  ;;  %v2464_v5 = vsel %vm2357_vm3, %v2124_v22, %v882_v42  ;;  %vm910_vm5 = vweird.f32 %v2244_v21  ;;  %v945_v40 = vand.u32 2147483648, %v2028_v11  ;;  %v3252_v37 = vld [vmem:[#allocation5_spill] sm:$0xff] }
 0x11a   : > { %v908_v31 = vadd.f32 %v2244_v21, %v907_v57  ;;  %vm2477_vm8 = vcmp.eq.f32.partialorder %v928_v61, 8.507059e+37  ;;  %vm2481_vm3 = vcmp.eq.f32.partialorder %v943_v55, 8.507059e+37  ;;  %v951_v25 = vsub.f32 1.0, %v950_v4  ;;  %vm2506_vm6 = vmor %vm909_vm15, %vm910_vm5 }
 0x11b   : > { %v965_v28 = vmul.f32 %v2435_v32, %v2039_v14  ;;  %v897_v35 = vsel %vm2472_vm13, %v2192_v30, %v893_v8  ;;  %v923_v27 = vadd.f32 %v2270_v53, %v922_v6  ;;  %vm925_vm0 = vweird.f32 %v2270_v53 }
 0x11c   : > { %1592 = vrcp.f32 %v3242_v48  ;;  %v2493_v41 = vpop.eup %1588  ;;  %v938_v38 = vadd.f32 %v2279_v56, %v937_v26  ;;  %vm940_vm2 = vweird.f32 %v2279_v56  ;;  %v958_v47 = vand.u32 2147483647, %v2033_v12  ;;  %vm2525_vm7 = vmor %vm924_vm4, %vm925_vm0 }
 0x11d   : > { %v980_v9 = vmul.f32 %v2454_v50, %v2047_v15  ;;  %v2500_v62 = vpop.eup %1590  ;;  %v946_v3 = vor.u32 1.1754944e-38, %v945_v40  ;;  %v960_v24 = vand.u32 2147483648, %v2033_v12  ;;  %v975_v52 = vand.u32 2147483648, %v2039_v14  ;;  %vm2537_vm11 = vmor %vm939_vm10, %vm940_vm2 }
 0x11e   : > { %1594 = vrcp.f32 %v3245_v10  ;;  %v2516_v63 = vsel %vm2422_vm14, %v2220_v36, %v897_v35  ;;  %v912_v49 = vsel %vm2506_vm6, %v2244_v21, %v908_v31  ;;  %v952_v60 = vmul.f32 %v2375_v29, %v951_v25 }
 0x11f   : > { %v966_v1 = vsub.f32 1.0, %v965_v28  ;;  %v927_v36 = vsel %vm2525_vm7, %v2270_v53, %v923_v27  ;;  %vm954_vm1 = vweird.f32 %v2033_v12  ;;  %v973_v2 = vand.u32 2147483647, %v2039_v14  ;;  %v3257_v27 = vld [vmem:[#allocation6_spill] sm:$0xff]  ;;  %v3284_v53 = vld [vmem:[#allocation11_spill] sm:$0xff] }
 0x120   : > { %v995_v33 = vmul.f32 %v2493_v41, %v2049_v23  ;;  %v942_v19 = vsel %vm2537_vm11, %v2279_v56, %v938_v38  ;;  %vm2548_vm15 = vcmp.eq.f32.partialorder %v958_v47, 8.507059e+37  ;;  %vm969_vm12 = vweird.f32 %v2039_v14 }
 0x121   : > { %v981_v11 = vsub.f32 1.0, %v980_v9  ;;  %v990_v46 = vand.u32 2147483648, %v2047_v15  ;;  %v1010_v61 = vmul.f32 %v2500_v62, %v2056_v45  ;;  %v2561_v42 = vsel %vm2448_vm9, %v2222_v13, %v912_v49 }
 0x122   : > { %v2556_v55 = vpop.eup %1592  ;;  %vm955_vm14 = vweird.f32 %v2375_v29  ;;  %v961_v56 = vor.u32 1.1754944e-38, %v960_v24  ;;  %v976_v57 = vor.u32 1.1754944e-38, %v975_v52  ;;  %v953_v4 = vadd.f32 %v2375_v29, %v952_v60  ;;  %v3260_v60 = vld [vmem:[#allocation7_spill] sm:$0xff] }
 0x123   : > { %v967_v8 = vmul.f32 %v2435_v32, %v966_v1  ;;  %vm984_vm4 = vweird.f32 %v2047_v15  ;;  %v988_v6 = vand.u32 2147483647, %v2047_v15  ;;  %1596 = vrcp.f32 %v3252_v37  ;;  %vm2591_vm5 = vmor %vm954_vm1, %vm955_vm14 }
 0x124   : > { %v2569_v26 = vpop.eup %1594  ;;  %v2573_v13 = vsel %vm2477_vm8, %v931_v34, %v927_v36  ;;  %v2577_v58 = vsel %vm2481_vm3, %v946_v3, %v942_v19  ;;  %vm970_vm9 = vweird.f32 %v2435_v32  ;;  %v996_v40 = vsub.f32 1.0, %v995_v33 }
 0x125   : > { %vm2580_vm10 = vcmp.eq.f32.partialorder %v973_v2, 8.507059e+37  ;;  %v982_v31 = vmul.f32 %v2454_v50, %v981_v11  ;;  %v991_v25 = vor.u32 1.1754944e-38, %v990_v46  ;;  %v1011_v28 = vsub.f32 1.0, %v1010_v61  ;;  %vm2627_vm2 = vmor %vm969_vm12, %vm970_vm9 }
 0x126   : > { %v1025_v44 = vmul.f32 %v2556_v55, %v3242_v48  ;;  %vm999_vm13 = vweird.f32 %v2049_v23  ;;  %v1003_v22 = vand.u32 2147483647, %v2049_v23  ;;  %v1005_v35 = vand.u32 2147483648, %v2049_v23 }
 0x127   : > { %1598 = vrcp.f32 %v3257_v27  ;;  %v957_v38 = vsel %vm2591_vm5, %v2375_v29, %v953_v4  ;;  %v968_v47 = vadd.f32 %v2435_v32, %v967_v8  ;;  %vm2603_vm8 = vcmp.eq.f32.partialorder %v988_v6, 8.507059e+37  ;;  %v3269_v8 = vld [vmem:[#allocation8_spill] sm:$0xff] }
 0x128   : > { %v1018_v9 = vand.u32 2147483647, %v2056_v45  ;;  %v1040_v30 = vmul.f32 %v2569_v26, %v3245_v10  ;;  %vm985_vm3 = vweird.f32 %v2454_v50  ;;  %v997_v3 = vmul.f32 %v2493_v41, %v996_v40 }
 0x129   : > { %vm1014_vm0 = vweird.f32 %v2056_v45  ;;  %v1020_v24 = vand.u32 2147483648, %v2056_v45  ;;  %v2614_v29 = vpop.eup %1596  ;;  %v983_v52 = vadd.f32 %v2454_v50, %v982_v31  ;;  %v1012_v49 = vmul.f32 %v2500_v62, %v1011_v28 }
 0x12a   : > { %v1026_v17 = vsub.f32 1.0, %v1025_v44  ;;  %1600 = vrcp.f32 %v3260_v60  ;;  %v2621_v1 = vsel %vm2548_vm15, %v961_v56, %v957_v38  ;;  %vm1000_vm6 = vweird.f32 %v2493_v41  ;;  %vm2654_vm15 = vmor %vm984_vm4, %vm985_vm3 }
 0x12b   : > { %v1006_v21 = vor.u32 1.1754944e-38, %v1005_v35  ;;  %v1035_v2 = vand.u32 2147483648, %v3242_v48  ;;  %v972_v33 = vsel %vm2627_vm2, %v2435_v32, %v968_v47  ;;  %vm2636_vm7 = vcmp.eq.f32.partialorder %v1003_v22, 8.507059e+37  ;;  %vm2679_vm4 = vmor %vm999_vm13, %vm1000_vm6  ;;  %v3274_v47 = vld [vmem:[#allocation9_spill] sm:$0xff] }
 0x12c   : > { %vm2640_vm11 = vcmp.eq.f32.partialorder %v1018_v9, 8.507059e+37  ;;  %vm1029_vm1 = vweird.f32 %v3242_v48  ;;  %v1033_v14 = vand.u32 2147483647, %v3242_v48  ;;  %v1041_v11 = vsub.f32 1.0, %v1040_v30 }
 0x12d   : > { %v1055_v46 = vmul.f32 %v2614_v29, %v3252_v37  ;;  %v2648_v61 = vpop.eup %1598  ;;  %v998_v56 = vadd.f32 %v2493_v41, %v997_v3  ;;  %vm1015_vm12 = vweird.f32 %v2500_v62  ;;  %v1021_v4 = vor.u32 1.1754944e-38, %v1020_v24  ;;  %v3279_v24 = vld [vmem:[#allocation10_spill] sm:$0xff] }
 0x12e   : > { %1602 = vrcp.f32 %v3269_v8  ;;  %v987_v6 = vsel %vm2654_vm15, %v2454_v50, %v983_v52  ;;  %v1013_v40 = vadd.f32 %v2500_v62, %v1012_v49  ;;  %v1027_v31 = vmul.f32 %v2556_v55, %v1026_v17 }
 0x12f   : > { %v1048_v15 = vand.u32 2147483647, %v3245_v10  ;;  %v2669_v28 = vsel %vm2580_vm10, %v976_v57, %v972_v33  ;;  %v1036_v44 = vor.u32 1.1754944e-38, %v1035_v2  ;;  %vm1044_vm14 = vweird.f32 %v3245_v10  ;;  %vm2702_vm10 = vmor %vm1014_vm0, %vm1015_vm12 }
 0x130   : > { %v1050_v34 = vand.u32 2147483648, %v3245_v10  ;;  %v2673_v22 = vpop.eup %1600  ;;  %vm2683_vm9 = vcmp.eq.f32.partialorder %v1033_v14, 8.507059e+37  ;;  %v1042_v57 = vmul.f32 %v2569_v26, %v1041_v11  ;;  %v1056_v18 = vsub.f32 1.0, %v1055_v46 }
 0x131   : > { %v1070_v38 = vmul.f32 %v2648_v61, %v3257_v27  ;;  %1604 = vrcp.f32 %v3274_v47  ;;  %v2693_v9 = vsel %vm2603_vm8, %v991_v25, %v987_v6  ;;  %v1002_v23 = vsel %vm2679_vm4, %v2493_v41, %v998_v56 }
 0x132   : > { %vm1030_vm5 = vweird.f32 %v2556_v55  ;;  %v1063_v3 = vand.u32 2147483647, %v3252_v37  ;;  %v1017_v25 = vsel %vm2702_vm10, %v2500_v62, %v1013_v40  ;;  %v1028_v12 = vadd.f32 %v2556_v55, %v1027_v31 }
 0x133   : > { %vm2712_vm13 = vcmp.eq.f32.partialorder %v1048_v15, 8.507059e+37  ;;  %v1065_v45 = vand.u32 2147483648, %v3252_v37  ;;  %1606 = vrcp.f32 %v3279_v24  ;;  %vm1045_vm8 = vweird.f32 %v2569_v26  ;;  %vm2740_vm3 = vmor %vm1029_vm1, %vm1030_vm5 }
 0x134   : > { %v2718_v52 = vpop.eup %1602  ;;  %v1051_v49 = vor.u32 1.1754944e-38, %v1050_v34  ;;  %v1080_v17 = vand.u32 2147483648, %v3257_v27  ;;  %v1085_v62 = vmul.f32 %v2673_v22, %v3260_v60  ;;  %v1043_v36 = vadd.f32 %v2569_v26, %v1042_v57 }
 0x135   : > { %v1057_v2 = vmul.f32 %v2614_v29, %v1056_v18  ;;  %v1071_v33 = vsub.f32 1.0, %v1070_v38  ;;  %v1100_v14 = vmul.f32 %v2718_v52, %v3269_v8  ;;  %v2730_v11 = vsel %vm2636_vm7, %v1006_v21, %v1002_v23 }
 0x136   : > { %v2734_v46 = vsel %vm2640_vm11, %v1021_v4, %v1017_v25  ;;  %vm1059_vm0 = vweird.f32 %v3252_v37  ;;  %v1078_v56 = vand.u32 2147483647, %v3257_v27  ;;  %v1032_v21 = vsel %vm2740_vm3, %v2556_v55, %v1028_v12  ;;  %vm2762_vm11 = vmor %vm1044_vm14, %vm1045_vm8  ;;  %v3294_v4 = vld [vmem:[#allocation13_spill] sm:$0xff] }
 0x137   : > { %v2746_v6 = vpop.eup %1604  ;;  %vm1060_vm2 = vweird.f32 %v2614_v29  ;;  %vm2752_vm6 = vcmp.eq.f32.partialorder %v1063_v3, 8.507059e+37  ;;  %v1066_v48 = vor.u32 1.1754944e-38, %v1065_v45  ;;  %vm1074_vm7 = vweird.f32 %v3257_v27 }
 0x138   : > { %1608 = vrcp.f32 %v3284_v53  ;;  %v1081_v55 = vor.u32 1.1754944e-38, %v1080_v17  ;;  %v1086_v40 = vsub.f32 1.0, %v1085_v62  ;;  %v1095_v31 = vand.u32 2147483648, %v3260_v60  ;;  %vm2800_vm4 = vmor %vm1059_vm0, %vm1060_vm2  ;;  %v3291_v62 = vld [vmem:[#allocation12_spill] sm:$0xff] }
 0x139   : > { %v1115_v15 = vmul.f32 %v2746_v6, %v3274_v47  ;;  %v2769_v34 = vpop.eup %1606  ;;  %v1047_v50 = vsel %vm2762_vm11, %v2569_v26, %v1043_v36  ;;  %v1058_v57 = vadd.f32 %v2614_v29, %v1057_v2  ;;  %v1072_v10 = vmul.f32 %v2648_v61, %v1071_v33 }
 0x13a   : > { %v1101_v18 = vsub.f32 1.0, %v1100_v14  ;;  %v2778_v38 = vsel %vm2683_vm9, %v1036_v44, %v1032_v21  ;;  %vm1089_vm1 = vweird.f32 %v3260_v60  ;;  %v1093_v23 = vand.u32 2147483647, %v3260_v60 }
 0x13b   : > { %v1116_v30 = vsub.f32 1.0, %v1115_v15  ;;  %v1130_v3 = vmul.f32 %v2769_v34, %v3279_v24  ;;  %vm1075_vm15 = vweird.f32 %v2648_v61  ;;  %vm2785_vm12 = vcmp.eq.f32.partialorder %v1078_v56, 8.507059e+37 }
 0x13c   : > { %vm1104_vm14 = vweird.f32 %v3269_v8  ;;  %v1108_v35 = vand.u32 2147483647, %v3269_v8  ;;  %v1110_v44 = vand.u32 2147483648, %v3269_v8  ;;  %v2794_v25 = vsel %vm2712_vm13, %v1051_v49, %v1047_v50  ;;  %vm2833_vm13 = vmor %vm1074_vm7, %vm1075_vm15 }
 0x13d   : > { %v1087_v45 = vmul.f32 %v2673_v22, %v1086_v40  ;;  %v1123_v17 = vand.u32 2147483647, %v3274_v47  ;;  %1610 = vrcp.f32 %v3291_v62  ;;  %v1062_v41 = vsel %vm2800_vm4, %v2614_v29, %v1058_v57 }
 0x13e   : > { %v2807_v36 = vpop.eup %1608  ;;  %v1073_v49 = vadd.f32 %v2648_v61, %v1072_v10  ;;  %v1096_v2 = vor.u32 1.1754944e-38, %v1095_v31  ;;  %v1102_v37 = vmul.f32 %v2718_v52, %v1101_v18  ;;  %vm2814_vm9 = vcmp.eq.f32.partialorder %v1093_v23, 8.507059e+37  ;;  %v3301_v10 = vld [vmem:[#allocation14_spill] sm:$0xff] }
 0x13f   : > { %v1117_v14 = vmul.f32 %v2746_v6, %v1116_v30  ;;  %vm1119_vm10 = vweird.f32 %v3274_v47  ;;  %v1131_v32 = vsub.f32 1.0, %v1130_v3  ;;  %v1145_v56 = vmul.f32 %v2807_v36, %v3284_v53 }
 0x140   : > { %vm1090_vm5 = vweird.f32 %v2673_v22  ;;  %v1111_v29 = vor.u32 1.1754944e-38, %v1110_v44  ;;  %v1125_v21 = vand.u32 2147483648, %v3274_v47  ;;  %1612 = vrcp.f32 %v3294_v4 }
 0x141   : > { %v2827_v40 = vsel %vm2752_vm6, %v1066_v48, %v1062_v41  ;;  %v1088_v15 = vadd.f32 %v2673_v22, %v1087_v45  ;;  %vm2838_vm8 = vcmp.eq.f32.partialorder %v1108_v35, 8.507059e+37  ;;  %vm2842_vm3 = vcmp.eq.f32.partialorder %v1123_v17, 8.507059e+37  ;;  %vm2863_vm7 = vmor %vm1089_vm1, %vm1090_vm5 }
 0x142   : > { %vm1134_vm0 = vweird.f32 %v3279_v24  ;;  %v1146_v19 = vsub.f32 1.0, %v1145_v56  ;;  %v1077_v27 = vsel %vm2833_vm13, %v2648_v61, %v1073_v49  ;;  %v1103_v48 = vadd.f32 %v2718_v52, %v1102_v37 }
 0x143   : > { %vm1105_vm2 = vweird.f32 %v2718_v52  ;;  %1614 = vrcp.f32 %v3301_v10  ;;  %v2853_v18 = vpop.eup %1610  ;;  %v1118_v23 = vadd.f32 %v2746_v6, %v1117_v14  ;;  %vm1120_vm6 = vweird.f32 %v2746_v6 }
 0x144   : > { %v1132_v30 = vmul.f32 %v2769_v34, %v1131_v32  ;;  %v1147_v3 = vmul.f32 %v2807_v36, %v1146_v19  ;;  %v1126_v35 = vor.u32 1.1754944e-38, %v1125_v21  ;;  %v1138_v44 = vand.u32 2147483647, %v3279_v24  ;;  %vm2880_vm11 = vmor %vm1104_vm14, %vm1105_vm2 }
 0x145   : > { %v1140_v12 = vand.u32 2147483648, %v3279_v24  ;;  %v1160_v45 = vmul.f32 %v2853_v18, %v3291_v62  ;;  %v2873_v17 = vsel %vm2785_vm12, %v1081_v55, %v1077_v27  ;;  %v1092_v60 = vsel %vm2863_vm7, %v2673_v22, %v1088_v15  ;;  %vm2895_vm15 = vmor %vm1119_vm10, %vm1120_vm6  ;;  %v3308_v22 = vld [vmem:[#allocation15_spill] sm:$0xff] }
 0x146   : > { %vm1149_vm1 = vweird.f32 %v3284_v53  ;;  %v1155_v49 = vand.u32 2147483648, %v3284_v53  ;;  %v2886_v37 = vpop.eup %1612  ;;  %v1107_v55 = vsel %vm2880_vm11, %v2718_v52, %v1103_v48  ;;  %vm1135_vm12 = vweird.f32 %v2769_v34 }
 0x147   : > { %vm1150_vm14 = vweird.f32 %v2807_v36  ;;  %1616 = vrcp.f32 %v3308_v22  ;;  %v1122_v26 = vsel %vm2895_vm15, %v2746_v6, %v1118_v23  ;;  %v2906_v52 = vadd.f32 %v2769_v34, %v1132_v30  ;;  %vm2924_vm4 = vmor %vm1134_vm0, %vm1135_vm12 }
 0x148   : > { %v2909_v14 = vadd.f32 %v2807_v36, %v1147_v3  ;;  %v1175_v47 = vmul.f32 %v2886_v37, %v3294_v4  ;;  %v2917_v56 = vsel %vm2814_vm9, %v1096_v2, %v1092_v60  ;;  %v2919_v21 = vor.u32 1.1754944e-38, %v1140_v12  ;;  %vm2943_vm9 = vmor %vm1149_vm1, %vm1150_vm14  ;;  %v1621_v12 = vld [vmem:[%s1712_s22 + $0x18] sm:$0xff] }
 0x149   : > { %v2913_v32 = vpop.eup %1614  ;;  %v1153_v31 = vand.u32 2147483647, %v3284_v53  ;;  %v1161_v6 = vsub.f32 1.0, %v1160_v45  ;;  %v1156_v19 = vor.u32 1.1754944e-38, %v1155_v49  ;;  %v1168_v27 = vand.u32 2147483647, %v3291_v62 }
 0x14a   : > { %v1176_v48 = vsub.f32 1.0, %v1175_v47  ;;  %v1190_v33 = vmul.f32 %v2913_v32, %v3301_v10  ;;  %v2933_v2 = vsel %vm2838_vm8, %v1111_v29, %v1107_v55  ;;  %v2937_v23 = vsel %vm2842_vm3, %v1126_v35, %v1122_v26 }
 0x14b   : > { %v1170_v3 = vand.u32 2147483648, %v3291_v62  ;;  %v1183_v61 = vand.u32 2147483647, %v3294_v4  ;;  %v1137_v29 = vsel %vm2924_vm4, %v2769_v34, %v2906_v52  ;;  %v1152_v50 = vsel %vm2943_vm9, %v2807_v36, %v2909_v14  ;;  %v1628_v52 = vld [vmem:[%s1712_s22 + $0x50] sm:$0xff] }
 0x14c   : > { %vm1179_vm10 = vweird.f32 %v3294_v4  ;;  %v1185_v53 = vand.u32 2147483648, %v3294_v4  ;;  %v1213_v57 = vand.u32 2147483647, %v3308_v22  ;;  %vm2962_vm5 = vcmp.eq.f32.partialorder %v1153_v31, 8.507059e+37 }
 0x14d   : > { %v2960_v35 = vpop.eup %1616  ;;  %v1162_v45 = vmul.f32 %v2853_v18, %v1161_v6  ;;  %vm1180_vm13 = vweird.f32 %v2886_v37  ;;  %vm1209_vm8 = vweird.f32 %v3308_v22  ;;  %v1215_v36 = vand.u32 2147483648, %v3308_v22 }
 0x14e   : > { %v1251_v60 = vrot.slane %v2300_v16, 4  ;;  %v1177_v41 = vmul.f32 %v2886_v37, %v1176_v48  ;;  %v1191_v49 = vsub.f32 1.0, %v1190_v33  ;;  %v1205_v55 = vmul.f32 %v2960_v35, %v3308_v22 }
 0x14f   : > { %v1252_v8 = vrot.slane %v2321_v0, 4  ;;  %v1253_v26 = vrot.slane %v2380_v59, 4  ;;  %v1254_v14 = vrot.slane %v2444_v51, 4  ;;  %v1255_v47 = vrot.slane %v2464_v5, 4 }
 0x150   : > { %v1256_v31 = vrot.slane %v2561_v42, 4  ;;  %vm1165_vm3 = vweird.f32 %v2853_v18  ;;  %v1206_v6 = vsub.f32 1.0, %v1205_v55  ;;  %v1257_v16 = vrot.slane %v2577_v58, 4 }
 0x151   : > { %v1258_v48 = vrot.slane %v2669_v28, 4  ;;  %v1259_v33 = vrot.slane %v2730_v11, 4  ;;  %v1260_v30 = vrot.slane %v2778_v38, 4  ;;  %v1261_v0 = vrot.slane %v2827_v40, 4 }
 0x152   : > { %v1262_v59 = vrot.slane %v2917_v56, 4  ;;  %vm3315_vm0 = vcmask 1043456   ;;  %vm1164_vm2 = vweird.f32 %v3291_v62  ;;  %v1178_v5 = vadd.f32 %v2886_v37, %v1177_v41 }
 0x153   : > { %v1267_v51 = vsel %vm3315_vm0, %v2284_v20, %v1251_v60  ;;  %v1192_v42 = vmul.f32 %v2913_v32, %v1191_v49  ;;  %v1207_v58 = vmul.f32 %v2960_v35, %v1206_v6  ;;  %vm3316_vm6 = vmmov %vm3315_vm0  ;;  %vm1210_vm7 = vweird.f32 %v2960_v35 }
 0x154   : > { %v1268_v28 = vsel %vm3316_vm6, %v2305_v43, %v1252_v8  ;;  %vm3317_vm11 = vmmov %vm3315_vm0  ;;  %v1216_v22 = vor.u32 1.1754944e-38, %v1215_v36 }
 0x155   : > { %v1269_v11 = vsel %vm3317_vm11, %v2371_v54, %v1253_v26  ;;  %vm3318_vm1 = vmmov %vm3315_vm0  ;;  %v1208_v40 = vadd.f32 %v2960_v35, %v1207_v58  ;;  %v1193_v55 = vadd.f32 %v2913_v32, %v1192_v42  ;;  %v1200_v26 = vand.u32 2147483648, %v3301_v10  ;;  %v1627_v58 = vld [vmem:[%s1712_s22 + $0x48] sm:$0xff]  ;;  %v1632_v54 = vld [vmem:[%s1712_s22 + $0x70] sm:$0xff] }
 0x156   : > { %v1270_v20 = vsel %vm3318_vm1, %v2395_v7, %v1254_v14  ;;  %vm3319_vm15 = vmmov %vm3315_vm0 }
 0x157   : > { %v1271_v38 = vsel %vm3319_vm15, %v2459_v39, %v1255_v47  ;;  %vm3320_vm12 = vmmov %vm3315_vm0  ;;  %v1302_v41 = vmul.f32 %v1621_v12, %v1270_v20 }
 0x158   : > { %v1272_v56 = vsel %vm3320_vm12, %v2516_v63, %v1256_v31  ;;  %vm3321_vm14 = vmmov %vm3315_vm0  ;;  %v1276_v63 = vsel %vm3318_vm1, %v2734_v46, %v1260_v30  ;;  %v1186_v46 = vor.u32 1.1754944e-38, %v1185_v53  ;;  %v1163_v53 = vadd.f32 %v2853_v18, %v1162_v45 }
 0x159   : > { %v1273_v43 = vsel %vm3321_vm14, %v2573_v13, %v1257_v16  ;;  %vm3322_vm9 = vmmov %vm3315_vm0  ;;  %vm3010_vm0 = vcmp.eq.f32.partialorder %v1138_v44, 8.507059e+37  ;;  %v1618_v44 = vld [vmem:[%s1712_s22] sm:$0xff]  ;;  %v1263_v45 = vrot.slane %v2937_v23, 4  ;;  %vm1194_vm14 = vweird.f32 %v3301_v10  ;;  %v1624_v23 = vld [vmem:[%s1712_s22 + $0x30] sm:$0xff]  ;;  %1318 = vst [vmem:[%s3037_s26 + $0x18] sm:$0xff] %v1302_v41 }
 0x15a   : > { %v1274_v60 = vsel %vm3322_vm9, %v2621_v1, %v1258_v48  ;;  %vm3018_vm6 = vmor %vm1179_vm10, %vm1180_vm13  ;;  %vm1184_vm10 = vcmp.eq.f32.partialorder %v1183_v61, 8.507059e+37  ;;  %v1620_v61 = vld [vmem:[%s1712_s22 + $0x10] sm:$0xff]  ;;  %v1198_v31 = vand.u32 2147483647, %v3301_v10  ;;  %v1305_v16 = vmul.f32 %v1624_v23, %v1273_v43  ;;  %v1631_v43 = vld [vmem:[%s1712_s22 + $0x68] sm:$0xff] }
 0x15b   : > { %vm3327_vm11 = vmmov %vm3318_vm1  ;;  %v1182_v24 = vsel %vm3018_vm6, %v2886_v37, %v1178_v5  ;;  %v1626_v5 = vld [vmem:[%s1712_s22 + $0x40] sm:$0xff]  ;;  %v1142_v62 = vsel %vm3010_vm0, %v2919_v21, %v1137_v29 }
 0x15c   : > { %v1275_v39 = vsel %vm3327_vm11, %v2693_v9, %v1259_v33  ;;  %vm3328_vm15 = vmmov %vm3318_vm1  ;;  %v1157_v9 = vsel %vm2962_vm5, %v1156_v19, %v1152_v50  ;;  %v1619_v19 = vld [vmem:[%s1712_s22 + $0x8] sm:$0xff]  ;;  %v1301_v50 = vmul.f32 %v1620_v61, %v1269_v11  ;;  %vm1214_vm5 = vcmp.eq.f32.partialorder %v1213_v57, 8.507059e+37  ;;  %1321 = vst [vmem:[%s3037_s26 + $0x30] sm:$0xff] %v1305_v16  ;;  %v1629_v11 = vld [vmem:[%s1712_s22 + $0x58] sm:$0xff] }
 0x15d   : > { %v1277_v13 = vsel %vm3328_vm15, %v2794_v25, %v1261_v0  ;;  %vm3329_vm12 = vmmov %vm3318_vm1  ;;  %v1300_v37 = vmul.f32 %v1619_v19, %v1268_v28  ;;  %v1187_v49 = vsel %vm1184_vm10, %v1186_v46, %v1182_v24  ;;  %v1623_v57 = vld [vmem:[%s1712_s22 + $0x28] sm:$0xff]  ;;  %v1264_v6 = vrot.slane %v1157_v9, 4  ;;  %v1625_v0 = vld [vmem:[%s1712_s22 + $0x38] sm:$0xff] }
 0x15e   : > { %v3030_v1 = vsel %vm3329_vm12, %v2873_v17, %v1262_v59  ;;  %vm3048_vm13 = vmor %vm1209_vm8, %vm1210_vm7  ;;  %v1299_v17 = vmul.f32 %v1618_v44, %v1267_v51  ;;  %vm1195_vm8 = vweird.f32 %v2913_v32  ;;  %v1304_v36 = vmul.f32 %v1623_v57, %v1272_v56  ;;  %1317 = vst [vmem:[%s3037_s26 + $0x10] sm:$0xff] %v1301_v50 }
 0x15f   : > { %v1212_v4 = vsel %vm3048_vm13, %v2960_v35, %v1208_v40  ;;  %v1622_v35 = vld [vmem:[%s1712_s22 + $0x20] sm:$0xff]  ;;  %1316 = vst [vmem:[%s3037_s26 + $0x8] sm:$0xff] %v1300_v37  ;;  %vm3072_vm7 = vmor %vm1164_vm2, %vm1165_vm3  ;;  %vm3085_vm3 = vcmp.eq.f32.partialorder %v1168_v27, 8.507059e+37  ;;  %v1265_v30 = vrot.slane %v1187_v49, 4  ;;  %v1306_v59 = vmul.f32 %v1625_v0, %v1274_v60 }
 0x160   : > { %v1303_v8 = vmul.f32 %v1622_v35, %v1271_v38  ;;  %1315 = vst [vmem:[%s3037_s26] sm:$0xff] %v1299_v17  ;;  %v1217_v14 = vsel %vm1214_vm5, %v1216_v22, %v1212_v4  ;;  %v1167_v48 = vsel %vm3072_vm7, %v2853_v18, %v1163_v53  ;;  %vm3091_vm2 = vmor %vm1194_vm14, %vm1195_vm8  ;;  %v1171_v18 = vor.u32 1.1754944e-38, %v1170_v3  ;;  %v1630_v40 = vld [vmem:[%s1712_s22 + $0x60] sm:$0xff] }
 0x161   : > { %v1197_v27 = vsel %vm3091_vm2, %v2913_v32, %v1193_v55  ;;  %v1266_v51 = vrot.slane %v1217_v14, 4  ;;  %v1307_v42 = vmul.f32 %v1626_v5, %v1275_v39  ;;  %v1201_v3 = vor.u32 1.1754944e-38, %v1200_v26  ;;  %vm3338_vm9 = vmmov %vm3318_vm1  ;;  %1320 = vst [vmem:[%s3037_s26 + $0x28] sm:$0xff] %v1304_v36  ;;  %v1633_v39 = vld [vmem:[%s1712_s22 + $0x78] sm:$0xff] }
 0x162   : > { %1319 = vst [vmem:[%s3037_s26 + $0x20] sm:$0xff] %v1303_v8  ;;  %v1279_v32 = vsel %vm3338_vm9, %v2933_v2, %v1263_v45  ;;  %v1308_v28 = vmul.f32 %v1627_v58, %v1276_v63  ;;  %v1172_v15 = vsel %vm3085_vm3, %v1171_v18, %v1167_v48  ;;  %vm1199_vm6 = vcmp.eq.f32.partialorder %v1198_v31, 8.507059e+37  ;;  %vm3339_vm4 = vmmov %vm3318_vm1 }
 0x163   : > { %v1280_v34 = vsel %vm3339_vm4, %v1142_v62, %v1264_v6  ;;  %v1309_v21 = vmul.f32 %v1628_v52, %v1277_v13  ;;  %v1202_v2 = vsel %vm1199_vm6, %v1201_v3, %v1197_v27  ;;  %vm3340_vm0 = vmmov %vm3318_vm1  ;;  %v1310_v20 = vmul.f32 %v1629_v11, %v3030_v1  ;;  %1322 = vst [vmem:[%s3037_s26 + $0x38] sm:$0xff] %v1306_v59 }
 0x164   : > { %v1281_v29 = vsel %vm3340_vm0, %v1172_v15, %v1265_v30  ;;  %vm3341_vm11 = vmmov %vm3340_vm0  ;;  %v1311_v56 = vmul.f32 %v1630_v40, %v1279_v32  ;;  %1323 = vst [vmem:[%s3037_s26 + $0x40] sm:$0xff] %v1307_v42  ;;  %v1312_v60 = vmul.f32 %v1631_v43, %v1280_v34 }
 0x165   : > { %v1282_v38 = vsel %vm3341_vm11, %v1202_v2, %v1266_v51  ;;  %1324 = vst [vmem:[%s3037_s26 + $0x48] sm:$0xff] %v1308_v28  ;;  %v1313_v7 = vmul.f32 %v1632_v54, %v1281_v29 }
 0x166   : > { %1325 = vst [vmem:[%s3037_s26 + $0x50] sm:$0xff] %v1309_v21  ;;  %v1314_v63 = vmul.f32 %v1633_v39, %v1282_v38 }
 0x167   : > { %1326 = vst [vmem:[%s3037_s26 + $0x58] sm:$0xff] %v1310_v20 }
 0x168   : > { %1327 = vst [vmem:[%s3037_s26 + $0x60] sm:$0xff] %v1311_v56 }
 0x169   : > { %1328 = vst [vmem:[%s3037_s26 + $0x68] sm:$0xff] %v1312_v60 }
 0x16a   : > { %1329 = vst [vmem:[%s3037_s26 + $0x70] sm:$0xff] %v1313_v7 }
 0x16b   : > { %1330 = vst [vmem:[%s3037_s26 + $0x78] sm:$0xff] %v1314_v63 }
 0x16c PF: > { %s14_s16 = sadd.s32 1, %s1656_s16   ;;  %s3342_s14 = smov %s1652_s15 }
 0x16d   : > { %p11_p5 = scmp.ge.s32.totalorder %s14_s16, 4   ;;  %s3343_s15 = smov %s3345_s1 }
 0x16f   :  { %13 = sbr.rel (!%p11_p5) target bundleno = 2 (0x2), region = 65 }

</bundles_post_ra>
